<compile_context>
chip_gen: v6e
topology: v6e:2x2x1
jax: 0.10.0
libtpu: 0.0.40
codegen_flags: <defaults>
</compile_context>

<pallas_src>
import functools

import jax
import jax.numpy as jnp
from jax.experimental import pallas as pl
from jax.experimental.pallas import tpu as pltpu


def _gather_kernel(tok_ref, table_hbm, out_ref, sem, *, tile_n):
    # tok_ref:   (N_pad,) int32, SMEM (scalar-prefetched token ids)
    # table_hbm: (vocab, d_model), HBM (no auto-DMA; memory_space=pl.ANY)
    # out_ref:   (tile_n, d_model), VMEM output tile
    # sem:       (tile_n,) DMA semaphores
    i = pl.program_id(0)
    base = i * tile_n

    # Phase 1: issue every row-DMA for this tile (tile_n is small & static, so
    # the Python loop is a cheap unroll).  All scalar SMEM reads happen here,
    # before any wait, so sst->sld forwarding is not broken by the waits.
    copies = []
    for j in range(tile_n):
        row = tok_ref[base + j]
        cp = pltpu.make_async_copy(table_hbm.at[row], out_ref.at[j], sem.at[j])
        cp.start()
        copies.append(cp)
    # Phase 2: wait for all of them; Pallas then writes the tile back to HBM
    # overlapped with the next grid step's fetches.
    for cp in copies:
        cp.wait()


def simple_embedding_forward(x, table, *, tile_n=None):
    """Pallas equivalent of SimpleEmbedding.forward (nn.Embedding lookup).

    Args:
      x:     int token ids, shape (batch, seq).
      table: float embedding weights, shape (vocab_size, d_model).
      tile_n: rows gathered per grid step (multiple of 8). Auto-chosen if None.

    Returns:
      embeddings of table.dtype, shape (batch, seq, d_model).
    """
    batch, seq = x.shape
    vocab, d_model = table.shape
    n = batch * seq

    if tile_n is None:
        # Enough rows per step to amortize the per-grid-step overhead, small
        # enough that the unrolled DMA-issue loop stays compact.
        tile_n = min(32, pl.cdiv(n, 8) * 8)
    assert tile_n % 8 == 0, "tile_n must be a multiple of 8 (sublane tiling)"

    n_pad = pl.cdiv(n, tile_n) * tile_n

    tok = x.reshape(n).astype(jnp.int32)
    # In-range ids match nn.Embedding exactly; out-of-range ids are clamped to
    # keep the row DMA in bounds (PyTorch would raise instead).
    tok = jnp.clip(tok, 0, vocab - 1)
    if n_pad != n:
        tok = jnp.pad(tok, (0, n_pad - n))  # padded rows gather row 0, sliced off below

    kernel = functools.partial(_gather_kernel, tile_n=tile_n)

    out_flat = pl.pallas_call(
        kernel,
        out_shape=jax.ShapeDtypeStruct((n_pad, d_model), table.dtype),
        grid_spec=pltpu.PrefetchScalarGridSpec(
            num_scalar_prefetch=1,            # token ids -> SMEM
            grid=(n_pad // tile_n,),
            in_specs=[
                # Embedding table stays in HBM; rows are fetched by manual DMA.
                pl.BlockSpec(memory_space=pl.ANY),
            ],
            out_specs=pl.BlockSpec((tile_n, d_model), lambda i, tok: (i, 0)),
            scratch_shapes=[pltpu.SemaphoreType.DMA((tile_n,))],
        ),
        compiler_params=pltpu.CompilerParams(
            dimension_semantics=("parallel",),
        ),
    )(tok, table)

    if n_pad != n:
        out_flat = out_flat[:n]
    return out_flat.reshape(batch, seq, d_model)


if __name__ == "__main__":
    key = jax.random.PRNGKey(0)

    # ---- Case 1: small shapes matching the module defaults ----------------
    vocab_size, d_model = 128, 128
    max_len = 16          # unused by forward, kept for parity with __init__
    batch, seq = 2, 8

    k_w, k_x, k_w2, k_x2 = jax.random.split(key, 4)

    # nn.Embedding default init: weight ~ N(0, 1), shape (vocab_size, d_model).
    table = jax.random.normal(k_w, (vocab_size, d_model), dtype=jnp.float32)
    x = jax.random.randint(k_x, (batch, seq), 0, vocab_size, dtype=jnp.int32)

    out = jax.block_until_ready(simple_embedding_forward(x, table))
    ref = jnp.take(table, x, axis=0)
    assert out.shape == (batch, seq, d_model)
    assert jnp.allclose(out, ref, atol=1e-6), "mismatch vs reference gather (case 1)"

    # ---- Case 2: exercises the padding path (n not a multiple of tile_n) --
    vocab2, d_model2 = 1000, 256
    batch2, seq2 = 2, 5
    table2 = jax.random.normal(k_w2, (vocab2, d_model2), dtype=jnp.float32)
    x2 = jax.random.randint(k_x2, (batch2, seq2), 0, vocab2, dtype=jnp.int32)

    out2 = jax.block_until_ready(simple_embedding_forward(x2, table2))
    ref2 = jnp.take(table2, x2, axis=0)
    assert out2.shape == (batch2, seq2, d_model2)
    assert jnp.allclose(out2, ref2, atol=1e-6), "mismatch vs reference gather (case 2)"

    print("KERNEL_OK")
</pallas_src>

<mosaic_0001>
module attributes {stable_mosaic.version = 11 : i64} {
  func.func @_gather_kernel(%arg0: i32, %arg1: memref<16xi32, #tpu.memory_space<smem>>, %arg2: memref<128x128xf32, #tpu.memory_space<any>>, %arg3: memref<16x128xf32, #tpu.memory_space<vmem>>, %arg4: memref<16x!tpu.dma_semaphore, #tpu.memory_space<semaphore_mem>>) attributes {dimension_semantics = [#tpu.dimension_semantics<parallel>], iteration_bounds = array<i64: 1>, scalar_prefetch = 1 : i64, scratch_operands = 1 : i64, tpu.core_type = #tpu.core_type<tc>, window_params = [{}, {transform_indices = @transform_1, window_bounds = array<i64: 16, 128>}]} {
    %c16_i32 = arith.constant 16 : i32
    %0 = arith.muli %arg0, %c16_i32 : i32
    %c0_i32 = arith.constant 0 : i32
    %1 = arith.addi %0, %c0_i32 : i32
    %2 = arith.index_cast %1 : i32 to index
    %3 = memref.load %arg1[%2] : memref<16xi32, #tpu.memory_space<smem>>
    %c0_i32_0 = arith.constant 0 : i32
    %c0_i32_1 = arith.constant 0 : i32
    %c0_i32_2 = arith.constant 0 : i32
    %4 = tpu.memref_slice %arg2[%3, %c0_i32_2] : memref<128x128xf32, #tpu.memory_space<any>> -> memref<1x128xf32, #tpu.memory_space<any>>
    %5 = tpu.memref_squeeze %4 : memref<1x128xf32, #tpu.memory_space<any>> -> memref<128xf32, #tpu.memory_space<any>>
    %c0_i32_3 = arith.constant 0 : i32
    %6 = tpu.memref_slice %arg3[%c0_i32_0, %c0_i32_3] : memref<16x128xf32, #tpu.memory_space<vmem>> -> memref<1x128xf32, #tpu.memory_space<vmem>>
    %7 = tpu.memref_squeeze %6 : memref<1x128xf32, #tpu.memory_space<vmem>> -> memref<128xf32, #tpu.memory_space<vmem>>
    %8 = tpu.memref_slice %arg4[%c0_i32_1] : memref<16x!tpu.dma_semaphore, #tpu.memory_space<semaphore_mem>> -> memref<1x!tpu.dma_semaphore, #tpu.memory_space<semaphore_mem>>
    %9 = tpu.memref_squeeze %8 : memref<1x!tpu.dma_semaphore, #tpu.memory_space<semaphore_mem>> -> memref<!tpu.dma_semaphore, #tpu.memory_space<semaphore_mem>>
    tpu.enqueue_dma source(%5 : memref<128xf32, #tpu.memory_space<any>>) target(%7 : memref<128xf32, #tpu.memory_space<vmem>>) target_semaphore(%9 : memref<!tpu.dma_semaphore, #tpu.memory_space<semaphore_mem>>)
    %c1_i32 = arith.constant 1 : i32
    %10 = arith.addi %0, %c1_i32 : i32
    %11 = arith.index_cast %10 : i32 to index
    %12 = memref.load %arg1[%11] : memref<16xi32, #tpu.memory_space<smem>>
    %c1_i32_4 = arith.constant 1 : i32
    %c1_i32_5 = arith.constant 1 : i32
    %c0_i32_6 = arith.constant 0 : i32
    %13 = tpu.memref_slice %arg2[%12, %c0_i32_6] : memref<128x128xf32, #tpu.memory_space<any>> -> memref<1x128xf32, #tpu.memory_space<any>>
    %14 = tpu.memref_squeeze %13 : memref<1x128xf32, #tpu.memory_space<any>> -> memref<128xf32, #tpu.memory_space<any>>
    %c0_i32_7 = arith.constant 0 : i32
    %15 = tpu.memref_slice %arg3[%c1_i32_4, %c0_i32_7] : memref<16x128xf32, #tpu.memory_space<vmem>> -> memref<1x128xf32, #tpu.memory_space<vmem>>
    %16 = tpu.memref_squeeze %15 : memref<1x128xf32, #tpu.memory_space<vmem>> -> memref<128xf32, #tpu.memory_space<vmem>>
    %17 = tpu.memref_slice %arg4[%c1_i32_5] : memref<16x!tpu.dma_semaphore, #tpu.memory_space<semaphore_mem>> -> memref<1x!tpu.dma_semaphore, #tpu.memory_space<semaphore_mem>>
    %18 = tpu.memref_squeeze %17 : memref<1x!tpu.dma_semaphore, #tpu.memory_space<semaphore_mem>> -> memref<!tpu.dma_semaphore, #tpu.memory_space<semaphore_mem>>
    tpu.enqueue_dma source(%14 : memref<128xf32, #tpu.memory_space<any>>) target(%16 : memref<128xf32, #tpu.memory_space<vmem>>) target_semaphore(%18 : memref<!tpu.dma_semaphore, #tpu.memory_space<semaphore_mem>>)
    %c2_i32 = arith.constant 2 : i32
    %19 = arith.addi %0, %c2_i32 : i32
    %20 = arith.index_cast %19 : i32 to index
    %21 = memref.load %arg1[%20] : memref<16xi32, #tpu.memory_space<smem>>
    %c2_i32_8 = arith.constant 2 : i32
    %c2_i32_9 = arith.constant 2 : i32
    %c0_i32_10 = arith.constant 0 : i32
    %22 = tpu.memref_slice %arg2[%21, %c0_i32_10] : memref<128x128xf32, #tpu.memory_space<any>> -> memref<1x128xf32, #tpu.memory_space<any>>
    %23 = tpu.memref_squeeze %22 : memref<1x128xf32, #tpu.memory_space<any>> -> memref<128xf32, #tpu.memory_space<any>>
    %c0_i32_11 = arith.constant 0 : i32
    %24 = tpu.memref_slice %arg3[%c2_i32_8, %c0_i32_11] : memref<16x128xf32, #tpu.memory_space<vmem>> -> memref<1x128xf32, #tpu.memory_space<vmem>>
    %25 = tpu.memref_squeeze %24 : memref<1x128xf32, #tpu.memory_space<vmem>> -> memref<128xf32, #tpu.memory_space<vmem>>
    %26 = tpu.memref_slice %arg4[%c2_i32_9] : memref<16x!tpu.dma_semaphore, #tpu.memory_space<semaphore_mem>> -> memref<1x!tpu.dma_semaphore, #tpu.memory_space<semaphore_mem>>
    %27 = tpu.memref_squeeze %26 : memref<1x!tpu.dma_semaphore, #tpu.memory_space<semaphore_mem>> -> memref<!tpu.dma_semaphore, #tpu.memory_space<semaphore_mem>>
    tpu.enqueue_dma source(%23 : memref<128xf32, #tpu.memory_space<any>>) target(%25 : memref<128xf32, #tpu.memory_space<vmem>>) target_semaphore(%27 : memref<!tpu.dma_semaphore, #tpu.memory_space<semaphore_mem>>)
    %c3_i32 = arith.constant 3 : i32
    %28 = arith.addi %0, %c3_i32 : i32
    %29 = arith.index_cast %28 : i32 to index
    %30 = memref.load %arg1[%29] : memref<16xi32, #tpu.memory_space<smem>>
    %c3_i32_12 = arith.constant 3 : i32
    %c3_i32_13 = arith.constant 3 : i32
    %c0_i32_14 = arith.constant 0 : i32
    %31 = tpu.memref_slice %arg2[%30, %c0_i32_14] : memref<128x128xf32, #tpu.memory_space<any>> -> memref<1x128xf32, #tpu.memory_space<any>>
    %32 = tpu.memref_squeeze %31 : memref<1x128xf32, #tpu.memory_space<any>> -> memref<128xf32, #tpu.memory_space<any>>
    %c0_i32_15 = arith.constant 0 : i32
    %33 = tpu.memref_slice %arg3[%c3_i32_12, %c0_i32_15] : memref<16x128xf32, #tpu.memory_space<vmem>> -> memref<1x128xf32, #tpu.memory_space<vmem>>
    %34 = tpu.memref_squeeze %33 : memref<1x128xf32, #tpu.memory_space<vmem>> -> memref<128xf32, #tpu.memory_space<vmem>>
    %35 = tpu.memref_slice %arg4[%c3_i32_13] : memref<16x!tpu.dma_semaphore, #tpu.memory_space<semaphore_mem>> -> memref<1x!tpu.dma_semaphore, #tpu.memory_space<semaphore_mem>>
    %36 = tpu.memref_squeeze %35 : memref<1x!tpu.dma_semaphore, #tpu.memory_space<semaphore_mem>> -> memref<!tpu.dma_semaphore, #tpu.memory_space<semaphore_mem>>
    tpu.enqueue_dma source(%32 : memref<128xf32, #tpu.memory_space<any>>) target(%34 : memref<128xf32, #tpu.memory_space<vmem>>) target_semaphore(%36 : memref<!tpu.dma_semaphore, #tpu.memory_space<semaphore_mem>>)
    %c4_i32 = arith.constant 4 : i32
    %37 = arith.addi %0, %c4_i32 : i32
    %38 = arith.index_cast %37 : i32 to index
    %39 = memref.load %arg1[%38] : memref<16xi32, #tpu.memory_space<smem>>
    %c4_i32_16 = arith.constant 4 : i32
    %c4_i32_17 = arith.constant 4 : i32
    %c0_i32_18 = arith.constant 0 : i32
    %40 = tpu.memref_slice %arg2[%39, %c0_i32_18] : memref<128x128xf32, #tpu.memory_space<any>> -> memref<1x128xf32, #tpu.memory_space<any>>
    %41 = tpu.memref_squeeze %40 : memref<1x128xf32, #tpu.memory_space<any>> -> memref<128xf32, #tpu.memory_space<any>>
    %c0_i32_19 = arith.constant 0 : i32
    %42 = tpu.memref_slice %arg3[%c4_i32_16, %c0_i32_19] : memref<16x128xf32, #tpu.memory_space<vmem>> -> memref<1x128xf32, #tpu.memory_space<vmem>>
    %43 = tpu.memref_squeeze %42 : memref<1x128xf32, #tpu.memory_space<vmem>> -> memref<128xf32, #tpu.memory_space<vmem>>
    %44 = tpu.memref_slice %arg4[%c4_i32_17] : memref<16x!tpu.dma_semaphore, #tpu.memory_space<semaphore_mem>> -> memref<1x!tpu.dma_semaphore, #tpu.memory_space<semaphore_mem>>
    %45 = tpu.memref_squeeze %44 : memref<1x!tpu.dma_semaphore, #tpu.memory_space<semaphore_mem>> -> memref<!tpu.dma_semaphore, #tpu.memory_space<semaphore_mem>>
    tpu.enqueue_dma source(%41 : memref<128xf32, #tpu.memory_space<any>>) target(%43 : memref<128xf32, #tpu.memory_space<vmem>>) target_semaphore(%45 : memref<!tpu.dma_semaphore, #tpu.memory_space<semaphore_mem>>)
    %c5_i32 = arith.constant 5 : i32
    %46 = arith.addi %0, %c5_i32 : i32
    %47 = arith.index_cast %46 : i32 to index
    %48 = memref.load %arg1[%47] : memref<16xi32, #tpu.memory_space<smem>>
    %c5_i32_20 = arith.constant 5 : i32
    %c5_i32_21 = arith.constant 5 : i32
    %c0_i32_22 = arith.constant 0 : i32
    %49 = tpu.memref_slice %arg2[%48, %c0_i32_22] : memref<128x128xf32, #tpu.memory_space<any>> -> memref<1x128xf32, #tpu.memory_space<any>>
    %50 = tpu.memref_squeeze %49 : memref<1x128xf32, #tpu.memory_space<any>> -> memref<128xf32, #tpu.memory_space<any>>
    %c0_i32_23 = arith.constant 0 : i32
    %51 = tpu.memref_slice %arg3[%c5_i32_20, %c0_i32_23] : memref<16x128xf32, #tpu.memory_space<vmem>> -> memref<1x128xf32, #tpu.memory_space<vmem>>
    %52 = tpu.memref_squeeze %51 : memref<1x128xf32, #tpu.memory_space<vmem>> -> memref<128xf32, #tpu.memory_space<vmem>>
    %53 = tpu.memref_slice %arg4[%c5_i32_21] : memref<16x!tpu.dma_semaphore, #tpu.memory_space<semaphore_mem>> -> memref<1x!tpu.dma_semaphore, #tpu.memory_space<semaphore_mem>>
    %54 = tpu.memref_squeeze %53 : memref<1x!tpu.dma_semaphore, #tpu.memory_space<semaphore_mem>> -> memref<!tpu.dma_semaphore, #tpu.memory_space<semaphore_mem>>
    tpu.enqueue_dma source(%50 : memref<128xf32, #tpu.memory_space<any>>) target(%52 : memref<128xf32, #tpu.memory_space<vmem>>) target_semaphore(%54 : memref<!tpu.dma_semaphore, #tpu.memory_space<semaphore_mem>>)
    %c6_i32 = arith.constant 6 : i32
    %55 = arith.addi %0, %c6_i32 : i32
    %56 = arith.index_cast %55 : i32 to index
    %57 = memref.load %arg1[%56] : memref<16xi32, #tpu.memory_space<smem>>
    %c6_i32_24 = arith.constant 6 : i32
    %c6_i32_25 = arith.constant 6 : i32
    %c0_i32_26 = arith.constant 0 : i32
    %58 = tpu.memref_slice %arg2[%57, %c0_i32_26] : memref<128x128xf32, #tpu.memory_space<any>> -> memref<1x128xf32, #tpu.memory_space<any>>
    %59 = tpu.memref_squeeze %58 : memref<1x128xf32, #tpu.memory_space<any>> -> memref<128xf32, #tpu.memory_space<any>>
    %c0_i32_27 = arith.constant 0 : i32
    %60 = tpu.memref_slice %arg3[%c6_i32_24, %c0_i32_27] : memref<16x128xf32, #tpu.memory_space<vmem>> -> memref<1x128xf32, #tpu.memory_space<vmem>>
    %61 = tpu.memref_squeeze %60 : memref<1x128xf32, #tpu.memory_space<vmem>> -> memref<128xf32, #tpu.memory_space<vmem>>
    %62 = tpu.memref_slice %arg4[%c6_i32_25] : memref<16x!tpu.dma_semaphore, #tpu.memory_space<semaphore_mem>> -> memref<1x!tpu.dma_semaphore, #tpu.memory_space<semaphore_mem>>
    %63 = tpu.memref_squeeze %62 : memref<1x!tpu.dma_semaphore, #tpu.memory_space<semaphore_mem>> -> memref<!tpu.dma_semaphore, #tpu.memory_space<semaphore_mem>>
    tpu.enqueue_dma source(%59 : memref<128xf32, #tpu.memory_space<any>>) target(%61 : memref<128xf32, #tpu.memory_space<vmem>>) target_semaphore(%63 : memref<!tpu.dma_semaphore, #tpu.memory_space<semaphore_mem>>)
    %c7_i32 = arith.constant 7 : i32
    %64 = arith.addi %0, %c7_i32 : i32
    %65 = arith.index_cast %64 : i32 to index
    %66 = memref.load %arg1[%65] : memref<16xi32, #tpu.memory_space<smem>>
    %c7_i32_28 = arith.constant 7 : i32
    %c7_i32_29 = arith.constant 7 : i32
    %c0_i32_30 = arith.constant 0 : i32
    %67 = tpu.memref_slice %arg2[%66, %c0_i32_30] : memref<128x128xf32, #tpu.memory_space<any>> -> memref<1x128xf32, #tpu.memory_space<any>>
    %68 = tpu.memref_squeeze %67 : memref<1x128xf32, #tpu.memory_space<any>> -> memref<128xf32, #tpu.memory_space<any>>
    %c0_i32_31 = arith.constant 0 : i32
    %69 = tpu.memref_slice %arg3[%c7_i32_28, %c0_i32_31] : memref<16x128xf32, #tpu.memory_space<vmem>> -> memref<1x128xf32, #tpu.memory_space<vmem>>
    %70 = tpu.memref_squeeze %69 : memref<1x128xf32, #tpu.memory_space<vmem>> -> memref<128xf32, #tpu.memory_space<vmem>>
    %71 = tpu.memref_slice %arg4[%c7_i32_29] : memref<16x!tpu.dma_semaphore, #tpu.memory_space<semaphore_mem>> -> memref<1x!tpu.dma_semaphore, #tpu.memory_space<semaphore_mem>>
    %72 = tpu.memref_squeeze %71 : memref<1x!tpu.dma_semaphore, #tpu.memory_space<semaphore_mem>> -> memref<!tpu.dma_semaphore, #tpu.memory_space<semaphore_mem>>
    tpu.enqueue_dma source(%68 : memref<128xf32, #tpu.memory_space<any>>) target(%70 : memref<128xf32, #tpu.memory_space<vmem>>) target_semaphore(%72 : memref<!tpu.dma_semaphore, #tpu.memory_space<semaphore_mem>>)
    %c8_i32 = arith.constant 8 : i32
    %73 = arith.addi %0, %c8_i32 : i32
    %74 = arith.index_cast %73 : i32 to index
    %75 = memref.load %arg1[%74] : memref<16xi32, #tpu.memory_space<smem>>
    %c8_i32_32 = arith.constant 8 : i32
    %c8_i32_33 = arith.constant 8 : i32
    %c0_i32_34 = arith.constant 0 : i32
    %76 = tpu.memref_slice %arg2[%75, %c0_i32_34] : memref<128x128xf32, #tpu.memory_space<any>> -> memref<1x128xf32, #tpu.memory_space<any>>
    %77 = tpu.memref_squeeze %76 : memref<1x128xf32, #tpu.memory_space<any>> -> memref<128xf32, #tpu.memory_space<any>>
    %c0_i32_35 = arith.constant 0 : i32
    %78 = tpu.memref_slice %arg3[%c8_i32_32, %c0_i32_35] : memref<16x128xf32, #tpu.memory_space<vmem>> -> memref<1x128xf32, #tpu.memory_space<vmem>>
    %79 = tpu.memref_squeeze %78 : memref<1x128xf32, #tpu.memory_space<vmem>> -> memref<128xf32, #tpu.memory_space<vmem>>
    %80 = tpu.memref_slice %arg4[%c8_i32_33] : memref<16x!tpu.dma_semaphore, #tpu.memory_space<semaphore_mem>> -> memref<1x!tpu.dma_semaphore, #tpu.memory_space<semaphore_mem>>
    %81 = tpu.memref_squeeze %80 : memref<1x!tpu.dma_semaphore, #tpu.memory_space<semaphore_mem>> -> memref<!tpu.dma_semaphore, #tpu.memory_space<semaphore_mem>>
    tpu.enqueue_dma source(%77 : memref<128xf32, #tpu.memory_space<any>>) target(%79 : memref<128xf32, #tpu.memory_space<vmem>>) target_semaphore(%81 : memref<!tpu.dma_semaphore, #tpu.memory_space<semaphore_mem>>)
    %c9_i32 = arith.constant 9 : i32
    %82 = arith.addi %0, %c9_i32 : i32
    %83 = arith.index_cast %82 : i32 to index
    %84 = memref.load %arg1[%83] : memref<16xi32, #tpu.memory_space<smem>>
    %c9_i32_36 = arith.constant 9 : i32
    %c9_i32_37 = arith.constant 9 : i32
    %c0_i32_38 = arith.constant 0 : i32
    %85 = tpu.memref_slice %arg2[%84, %c0_i32_38] : memref<128x128xf32, #tpu.memory_space<any>> -> memref<1x128xf32, #tpu.memory_space<any>>
    %86 = tpu.memref_squeeze %85 : memref<1x128xf32, #tpu.memory_space<any>> -> memref<128xf32, #tpu.memory_space<any>>
    %c0_i32_39 = arith.constant 0 : i32
    %87 = tpu.memref_slice %arg3[%c9_i32_36, %c0_i32_39] : memref<16x128xf32, #tpu.memory_space<vmem>> -> memref<1x128xf32, #tpu.memory_space<vmem>>
    %88 = tpu.memref_squeeze %87 : memref<1x128xf32, #tpu.memory_space<vmem>> -> memref<128xf32, #tpu.memory_space<vmem>>
    %89 = tpu.memref_slice %arg4[%c9_i32_37] : memref<16x!tpu.dma_semaphore, #tpu.memory_space<semaphore_mem>> -> memref<1x!tpu.dma_semaphore, #tpu.memory_space<semaphore_mem>>
    %90 = tpu.memref_squeeze %89 : memref<1x!tpu.dma_semaphore, #tpu.memory_space<semaphore_mem>> -> memref<!tpu.dma_semaphore, #tpu.memory_space<semaphore_mem>>
    tpu.enqueue_dma source(%86 : memref<128xf32, #tpu.memory_space<any>>) target(%88 : memref<128xf32, #tpu.memory_space<vmem>>) target_semaphore(%90 : memref<!tpu.dma_semaphore, #tpu.memory_space<semaphore_mem>>)
    %c10_i32 = arith.constant 10 : i32
    %91 = arith.addi %0, %c10_i32 : i32
    %92 = arith.index_cast %91 : i32 to index
    %93 = memref.load %arg1[%92] : memref<16xi32, #tpu.memory_space<smem>>
    %c10_i32_40 = arith.constant 10 : i32
    %c10_i32_41 = arith.constant 10 : i32
    %c0_i32_42 = arith.constant 0 : i32
    %94 = tpu.memref_slice %arg2[%93, %c0_i32_42] : memref<128x128xf32, #tpu.memory_space<any>> -> memref<1x128xf32, #tpu.memory_space<any>>
    %95 = tpu.memref_squeeze %94 : memref<1x128xf32, #tpu.memory_space<any>> -> memref<128xf32, #tpu.memory_space<any>>
    %c0_i32_43 = arith.constant 0 : i32
    %96 = tpu.memref_slice %arg3[%c10_i32_40, %c0_i32_43] : memref<16x128xf32, #tpu.memory_space<vmem>> -> memref<1x128xf32, #tpu.memory_space<vmem>>
    %97 = tpu.memref_squeeze %96 : memref<1x128xf32, #tpu.memory_space<vmem>> -> memref<128xf32, #tpu.memory_space<vmem>>
    %98 = tpu.memref_slice %arg4[%c10_i32_41] : memref<16x!tpu.dma_semaphore, #tpu.memory_space<semaphore_mem>> -> memref<1x!tpu.dma_semaphore, #tpu.memory_space<semaphore_mem>>
    %99 = tpu.memref_squeeze %98 : memref<1x!tpu.dma_semaphore, #tpu.memory_space<semaphore_mem>> -> memref<!tpu.dma_semaphore, #tpu.memory_space<semaphore_mem>>
    tpu.enqueue_dma source(%95 : memref<128xf32, #tpu.memory_space<any>>) target(%97 : memref<128xf32, #tpu.memory_space<vmem>>) target_semaphore(%99 : memref<!tpu.dma_semaphore, #tpu.memory_space<semaphore_mem>>)
    %c11_i32 = arith.constant 11 : i32
    %100 = arith.addi %0, %c11_i32 : i32
    %101 = arith.index_cast %100 : i32 to index
    %102 = memref.load %arg1[%101] : memref<16xi32, #tpu.memory_space<smem>>
    %c11_i32_44 = arith.constant 11 : i32
    %c11_i32_45 = arith.constant 11 : i32
    %c0_i32_46 = arith.constant 0 : i32
    %103 = tpu.memref_slice %arg2[%102, %c0_i32_46] : memref<128x128xf32, #tpu.memory_space<any>> -> memref<1x128xf32, #tpu.memory_space<any>>
    %104 = tpu.memref_squeeze %103 : memref<1x128xf32, #tpu.memory_space<any>> -> memref<128xf32, #tpu.memory_space<any>>
    %c0_i32_47 = arith.constant 0 : i32
    %105 = tpu.memref_slice %arg3[%c11_i32_44, %c0_i32_47] : memref<16x128xf32, #tpu.memory_space<vmem>> -> memref<1x128xf32, #tpu.memory_space<vmem>>
    %106 = tpu.memref_squeeze %105 : memref<1x128xf32, #tpu.memory_space<vmem>> -> memref<128xf32, #tpu.memory_space<vmem>>
    %107 = tpu.memref_slice %arg4[%c11_i32_45] : memref<16x!tpu.dma_semaphore, #tpu.memory_space<semaphore_mem>> -> memref<1x!tpu.dma_semaphore, #tpu.memory_space<semaphore_mem>>
    %108 = tpu.memref_squeeze %107 : memref<1x!tpu.dma_semaphore, #tpu.memory_space<semaphore_mem>> -> memref<!tpu.dma_semaphore, #tpu.memory_space<semaphore_mem>>
    tpu.enqueue_dma source(%104 : memref<128xf32, #tpu.memory_space<any>>) target(%106 : memref<128xf32, #tpu.memory_space<vmem>>) target_semaphore(%108 : memref<!tpu.dma_semaphore, #tpu.memory_space<semaphore_mem>>)
    %c12_i32 = arith.constant 12 : i32
    %109 = arith.addi %0, %c12_i32 : i32
    %110 = arith.index_cast %109 : i32 to index
    %111 = memref.load %arg1[%110] : memref<16xi32, #tpu.memory_space<smem>>
    %c12_i32_48 = arith.constant 12 : i32
    %c12_i32_49 = arith.constant 12 : i32
    %c0_i32_50 = arith.constant 0 : i32
    %112 = tpu.memref_slice %arg2[%111, %c0_i32_50] : memref<128x128xf32, #tpu.memory_space<any>> -> memref<1x128xf32, #tpu.memory_space<any>>
    %113 = tpu.memref_squeeze %112 : memref<1x128xf32, #tpu.memory_space<any>> -> memref<128xf32, #tpu.memory_space<any>>
    %c0_i32_51 = arith.constant 0 : i32
    %114 = tpu.memref_slice %arg3[%c12_i32_48, %c0_i32_51] : memref<16x128xf32, #tpu.memory_space<vmem>> -> memref<1x128xf32, #tpu.memory_space<vmem>>
    %115 = tpu.memref_squeeze %114 : memref<1x128xf32, #tpu.memory_space<vmem>> -> memref<128xf32, #tpu.memory_space<vmem>>
    %116 = tpu.memref_slice %arg4[%c12_i32_49] : memref<16x!tpu.dma_semaphore, #tpu.memory_space<semaphore_mem>> -> memref<1x!tpu.dma_semaphore, #tpu.memory_space<semaphore_mem>>
    %117 = tpu.memref_squeeze %116 : memref<1x!tpu.dma_semaphore, #tpu.memory_space<semaphore_mem>> -> memref<!tpu.dma_semaphore, #tpu.memory_space<semaphore_mem>>
    tpu.enqueue_dma source(%113 : memref<128xf32, #tpu.memory_space<any>>) target(%115 : memref<128xf32, #tpu.memory_space<vmem>>) target_semaphore(%117 : memref<!tpu.dma_semaphore, #tpu.memory_space<semaphore_mem>>)
    %c13_i32 = arith.constant 13 : i32
    %118 = arith.addi %0, %c13_i32 : i32
    %119 = arith.index_cast %118 : i32 to index
    %120 = memref.load %arg1[%119] : memref<16xi32, #tpu.memory_space<smem>>
    %c13_i32_52 = arith.constant 13 : i32
    %c13_i32_53 = arith.constant 13 : i32
    %c0_i32_54 = arith.constant 0 : i32
    %121 = tpu.memref_slice %arg2[%120, %c0_i32_54] : memref<128x128xf32, #tpu.memory_space<any>> -> memref<1x128xf32, #tpu.memory_space<any>>
    %122 = tpu.memref_squeeze %121 : memref<1x128xf32, #tpu.memory_space<any>> -> memref<128xf32, #tpu.memory_space<any>>
    %c0_i32_55 = arith.constant 0 : i32
    %123 = tpu.memref_slice %arg3[%c13_i32_52, %c0_i32_55] : memref<16x128xf32, #tpu.memory_space<vmem>> -> memref<1x128xf32, #tpu.memory_space<vmem>>
    %124 = tpu.memref_squeeze %123 : memref<1x128xf32, #tpu.memory_space<vmem>> -> memref<128xf32, #tpu.memory_space<vmem>>
    %125 = tpu.memref_slice %arg4[%c13_i32_53] : memref<16x!tpu.dma_semaphore, #tpu.memory_space<semaphore_mem>> -> memref<1x!tpu.dma_semaphore, #tpu.memory_space<semaphore_mem>>
    %126 = tpu.memref_squeeze %125 : memref<1x!tpu.dma_semaphore, #tpu.memory_space<semaphore_mem>> -> memref<!tpu.dma_semaphore, #tpu.memory_space<semaphore_mem>>
    tpu.enqueue_dma source(%122 : memref<128xf32, #tpu.memory_space<any>>) target(%124 : memref<128xf32, #tpu.memory_space<vmem>>) target_semaphore(%126 : memref<!tpu.dma_semaphore, #tpu.memory_space<semaphore_mem>>)
    %c14_i32 = arith.constant 14 : i32
    %127 = arith.addi %0, %c14_i32 : i32
    %128 = arith.index_cast %127 : i32 to index
    %129 = memref.load %arg1[%128] : memref<16xi32, #tpu.memory_space<smem>>
    %c14_i32_56 = arith.constant 14 : i32
    %c14_i32_57 = arith.constant 14 : i32
    %c0_i32_58 = arith.constant 0 : i32
    %130 = tpu.memref_slice %arg2[%129, %c0_i32_58] : memref<128x128xf32, #tpu.memory_space<any>> -> memref<1x128xf32, #tpu.memory_space<any>>
    %131 = tpu.memref_squeeze %130 : memref<1x128xf32, #tpu.memory_space<any>> -> memref<128xf32, #tpu.memory_space<any>>
    %c0_i32_59 = arith.constant 0 : i32
    %132 = tpu.memref_slice %arg3[%c14_i32_56, %c0_i32_59] : memref<16x128xf32, #tpu.memory_space<vmem>> -> memref<1x128xf32, #tpu.memory_space<vmem>>
    %133 = tpu.memref_squeeze %132 : memref<1x128xf32, #tpu.memory_space<vmem>> -> memref<128xf32, #tpu.memory_space<vmem>>
    %134 = tpu.memref_slice %arg4[%c14_i32_57] : memref<16x!tpu.dma_semaphore, #tpu.memory_space<semaphore_mem>> -> memref<1x!tpu.dma_semaphore, #tpu.memory_space<semaphore_mem>>
    %135 = tpu.memref_squeeze %134 : memref<1x!tpu.dma_semaphore, #tpu.memory_space<semaphore_mem>> -> memref<!tpu.dma_semaphore, #tpu.memory_space<semaphore_mem>>
    tpu.enqueue_dma source(%131 : memref<128xf32, #tpu.memory_space<any>>) target(%133 : memref<128xf32, #tpu.memory_space<vmem>>) target_semaphore(%135 : memref<!tpu.dma_semaphore, #tpu.memory_space<semaphore_mem>>)
    %c15_i32 = arith.constant 15 : i32
    %136 = arith.addi %0, %c15_i32 : i32
    %137 = arith.index_cast %136 : i32 to index
    %138 = memref.load %arg1[%137] : memref<16xi32, #tpu.memory_space<smem>>
    %c15_i32_60 = arith.constant 15 : i32
    %c15_i32_61 = arith.constant 15 : i32
    %c0_i32_62 = arith.constant 0 : i32
    %139 = tpu.memref_slice %arg2[%138, %c0_i32_62] : memref<128x128xf32, #tpu.memory_space<any>> -> memref<1x128xf32, #tpu.memory_space<any>>
    %140 = tpu.memref_squeeze %139 : memref<1x128xf32, #tpu.memory_space<any>> -> memref<128xf32, #tpu.memory_space<any>>
    %c0_i32_63 = arith.constant 0 : i32
    %141 = tpu.memref_slice %arg3[%c15_i32_60, %c0_i32_63] : memref<16x128xf32, #tpu.memory_space<vmem>> -> memref<1x128xf32, #tpu.memory_space<vmem>>
    %142 = tpu.memref_squeeze %141 : memref<1x128xf32, #tpu.memory_space<vmem>> -> memref<128xf32, #tpu.memory_space<vmem>>
    %143 = tpu.memref_slice %arg4[%c15_i32_61] : memref<16x!tpu.dma_semaphore, #tpu.memory_space<semaphore_mem>> -> memref<1x!tpu.dma_semaphore, #tpu.memory_space<semaphore_mem>>
    %144 = tpu.memref_squeeze %143 : memref<1x!tpu.dma_semaphore, #tpu.memory_space<semaphore_mem>> -> memref<!tpu.dma_semaphore, #tpu.memory_space<semaphore_mem>>
    tpu.enqueue_dma source(%140 : memref<128xf32, #tpu.memory_space<any>>) target(%142 : memref<128xf32, #tpu.memory_space<vmem>>) target_semaphore(%144 : memref<!tpu.dma_semaphore, #tpu.memory_space<semaphore_mem>>)
    %c0_i32_64 = arith.constant 0 : i32
    %c0_i32_65 = arith.constant 0 : i32
    %c0_i32_66 = arith.constant 0 : i32
    %145 = tpu.memref_slice %arg2[%3, %c0_i32_66] : memref<128x128xf32, #tpu.memory_space<any>> -> memref<1x128xf32, #tpu.memory_space<any>>
    %146 = tpu.memref_squeeze %145 : memref<1x128xf32, #tpu.memory_space<any>> -> memref<128xf32, #tpu.memory_space<any>>
    %c0_i32_67 = arith.constant 0 : i32
    %147 = tpu.memref_slice %arg3[%c0_i32_64, %c0_i32_67] : memref<16x128xf32, #tpu.memory_space<vmem>> -> memref<1x128xf32, #tpu.memory_space<vmem>>
    %148 = tpu.memref_squeeze %147 : memref<1x128xf32, #tpu.memory_space<vmem>> -> memref<128xf32, #tpu.memory_space<vmem>>
    %149 = tpu.memref_slice %arg4[%c0_i32_65] : memref<16x!tpu.dma_semaphore, #tpu.memory_space<semaphore_mem>> -> memref<1x!tpu.dma_semaphore, #tpu.memory_space<semaphore_mem>>
    %150 = tpu.memref_squeeze %149 : memref<1x!tpu.dma_semaphore, #tpu.memory_space<semaphore_mem>> -> memref<!tpu.dma_semaphore, #tpu.memory_space<semaphore_mem>>
    tpu.wait_dma2 semaphore(%150 : memref<!tpu.dma_semaphore, #tpu.memory_space<semaphore_mem>>) src(%146 : memref<128xf32, #tpu.memory_space<any>>) dst(%148 : memref<128xf32, #tpu.memory_space<vmem>>)
    %c1_i32_68 = arith.constant 1 : i32
    %c1_i32_69 = arith.constant 1 : i32
    %c0_i32_70 = arith.constant 0 : i32
    %151 = tpu.memref_slice %arg2[%12, %c0_i32_70] : memref<128x128xf32, #tpu.memory_space<any>> -> memref<1x128xf32, #tpu.memory_space<any>>
    %152 = tpu.memref_squeeze %151 : memref<1x128xf32, #tpu.memory_space<any>> -> memref<128xf32, #tpu.memory_space<any>>
    %c0_i32_71 = arith.constant 0 : i32
    %153 = tpu.memref_slice %arg3[%c1_i32_68, %c0_i32_71] : memref<16x128xf32, #tpu.memory_space<vmem>> -> memref<1x128xf32, #tpu.memory_space<vmem>>
    %154 = tpu.memref_squeeze %153 : memref<1x128xf32, #tpu.memory_space<vmem>> -> memref<128xf32, #tpu.memory_space<vmem>>
    %155 = tpu.memref_slice %arg4[%c1_i32_69] : memref<16x!tpu.dma_semaphore, #tpu.memory_space<semaphore_mem>> -> memref<1x!tpu.dma_semaphore, #tpu.memory_space<semaphore_mem>>
    %156 = tpu.memref_squeeze %155 : memref<1x!tpu.dma_semaphore, #tpu.memory_space<semaphore_mem>> -> memref<!tpu.dma_semaphore, #tpu.memory_space<semaphore_mem>>
    tpu.wait_dma2 semaphore(%156 : memref<!tpu.dma_semaphore, #tpu.memory_space<semaphore_mem>>) src(%152 : memref<128xf32, #tpu.memory_space<any>>) dst(%154 : memref<128xf32, #tpu.memory_space<vmem>>)
    %c2_i32_72 = arith.constant 2 : i32
    %c2_i32_73 = arith.constant 2 : i32
    %c0_i32_74 = arith.constant 0 : i32
    %157 = tpu.memref_slice %arg2[%21, %c0_i32_74] : memref<128x128xf32, #tpu.memory_space<any>> -> memref<1x128xf32, #tpu.memory_space<any>>
    %158 = tpu.memref_squeeze %157 : memref<1x128xf32, #tpu.memory_space<any>> -> memref<128xf32, #tpu.memory_space<any>>
    %c0_i32_75 = arith.constant 0 : i32
    %159 = tpu.memref_slice %arg3[%c2_i32_72, %c0_i32_75] : memref<16x128xf32, #tpu.memory_space<vmem>> -> memref<1x128xf32, #tpu.memory_space<vmem>>
    %160 = tpu.memref_squeeze %159 : memref<1x128xf32, #tpu.memory_space<vmem>> -> memref<128xf32, #tpu.memory_space<vmem>>
    %161 = tpu.memref_slice %arg4[%c2_i32_73] : memref<16x!tpu.dma_semaphore, #tpu.memory_space<semaphore_mem>> -> memref<1x!tpu.dma_semaphore, #tpu.memory_space<semaphore_mem>>
    %162 = tpu.memref_squeeze %161 : memref<1x!tpu.dma_semaphore, #tpu.memory_space<semaphore_mem>> -> memref<!tpu.dma_semaphore, #tpu.memory_space<semaphore_mem>>
    tpu.wait_dma2 semaphore(%162 : memref<!tpu.dma_semaphore, #tpu.memory_space<semaphore_mem>>) src(%158 : memref<128xf32, #tpu.memory_space<any>>) dst(%160 : memref<128xf32, #tpu.memory_space<vmem>>)
    %c3_i32_76 = arith.constant 3 : i32
    %c3_i32_77 = arith.constant 3 : i32
    %c0_i32_78 = arith.constant 0 : i32
    %163 = tpu.memref_slice %arg2[%30, %c0_i32_78] : memref<128x128xf32, #tpu.memory_space<any>> -> memref<1x128xf32, #tpu.memory_space<any>>
    %164 = tpu.memref_squeeze %163 : memref<1x128xf32, #tpu.memory_space<any>> -> memref<128xf32, #tpu.memory_space<any>>
    %c0_i32_79 = arith.constant 0 : i32
    %165 = tpu.memref_slice %arg3[%c3_i32_76, %c0_i32_79] : memref<16x128xf32, #tpu.memory_space<vmem>> -> memref<1x128xf32, #tpu.memory_space<vmem>>
    %166 = tpu.memref_squeeze %165 : memref<1x128xf32, #tpu.memory_space<vmem>> -> memref<128xf32, #tpu.memory_space<vmem>>
    %167 = tpu.memref_slice %arg4[%c3_i32_77] : memref<16x!tpu.dma_semaphore, #tpu.memory_space<semaphore_mem>> -> memref<1x!tpu.dma_semaphore, #tpu.memory_space<semaphore_mem>>
    %168 = tpu.memref_squeeze %167 : memref<1x!tpu.dma_semaphore, #tpu.memory_space<semaphore_mem>> -> memref<!tpu.dma_semaphore, #tpu.memory_space<semaphore_mem>>
    tpu.wait_dma2 semaphore(%168 : memref<!tpu.dma_semaphore, #tpu.memory_space<semaphore_mem>>) src(%164 : memref<128xf32, #tpu.memory_space<any>>) dst(%166 : memref<128xf32, #tpu.memory_space<vmem>>)
    %c4_i32_80 = arith.constant 4 : i32
    %c4_i32_81 = arith.constant 4 : i32
    %c0_i32_82 = arith.constant 0 : i32
    %169 = tpu.memref_slice %arg2[%39, %c0_i32_82] : memref<128x128xf32, #tpu.memory_space<any>> -> memref<1x128xf32, #tpu.memory_space<any>>
    %170 = tpu.memref_squeeze %169 : memref<1x128xf32, #tpu.memory_space<any>> -> memref<128xf32, #tpu.memory_space<any>>
    %c0_i32_83 = arith.constant 0 : i32
    %171 = tpu.memref_slice %arg3[%c4_i32_80, %c0_i32_83] : memref<16x128xf32, #tpu.memory_space<vmem>> -> memref<1x128xf32, #tpu.memory_space<vmem>>
    %172 = tpu.memref_squeeze %171 : memref<1x128xf32, #tpu.memory_space<vmem>> -> memref<128xf32, #tpu.memory_space<vmem>>
    %173 = tpu.memref_slice %arg4[%c4_i32_81] : memref<16x!tpu.dma_semaphore, #tpu.memory_space<semaphore_mem>> -> memref<1x!tpu.dma_semaphore, #tpu.memory_space<semaphore_mem>>
    %174 = tpu.memref_squeeze %173 : memref<1x!tpu.dma_semaphore, #tpu.memory_space<semaphore_mem>> -> memref<!tpu.dma_semaphore, #tpu.memory_space<semaphore_mem>>
    tpu.wait_dma2 semaphore(%174 : memref<!tpu.dma_semaphore, #tpu.memory_space<semaphore_mem>>) src(%170 : memref<128xf32, #tpu.memory_space<any>>) dst(%172 : memref<128xf32, #tpu.memory_space<vmem>>)
    %c5_i32_84 = arith.constant 5 : i32
    %c5_i32_85 = arith.constant 5 : i32
    %c0_i32_86 = arith.constant 0 : i32
    %175 = tpu.memref_slice %arg2[%48, %c0_i32_86] : memref<128x128xf32, #tpu.memory_space<any>> -> memref<1x128xf32, #tpu.memory_space<any>>
    %176 = tpu.memref_squeeze %175 : memref<1x128xf32, #tpu.memory_space<any>> -> memref<128xf32, #tpu.memory_space<any>>
    %c0_i32_87 = arith.constant 0 : i32
    %177 = tpu.memref_slice %arg3[%c5_i32_84, %c0_i32_87] : memref<16x128xf32, #tpu.memory_space<vmem>> -> memref<1x128xf32, #tpu.memory_space<vmem>>
    %178 = tpu.memref_squeeze %177 : memref<1x128xf32, #tpu.memory_space<vmem>> -> memref<128xf32, #tpu.memory_space<vmem>>
    %179 = tpu.memref_slice %arg4[%c5_i32_85] : memref<16x!tpu.dma_semaphore, #tpu.memory_space<semaphore_mem>> -> memref<1x!tpu.dma_semaphore, #tpu.memory_space<semaphore_mem>>
    %180 = tpu.memref_squeeze %179 : memref<1x!tpu.dma_semaphore, #tpu.memory_space<semaphore_mem>> -> memref<!tpu.dma_semaphore, #tpu.memory_space<semaphore_mem>>
    tpu.wait_dma2 semaphore(%180 : memref<!tpu.dma_semaphore, #tpu.memory_space<semaphore_mem>>) src(%176 : memref<128xf32, #tpu.memory_space<any>>) dst(%178 : memref<128xf32, #tpu.memory_space<vmem>>)
    %c6_i32_88 = arith.constant 6 : i32
    %c6_i32_89 = arith.constant 6 : i32
    %c0_i32_90 = arith.constant 0 : i32
    %181 = tpu.memref_slice %arg2[%57, %c0_i32_90] : memref<128x128xf32, #tpu.memory_space<any>> -> memref<1x128xf32, #tpu.memory_space<any>>
    %182 = tpu.memref_squeeze %181 : memref<1x128xf32, #tpu.memory_space<any>> -> memref<128xf32, #tpu.memory_space<any>>
    %c0_i32_91 = arith.constant 0 : i32
    %183 = tpu.memref_slice %arg3[%c6_i32_88, %c0_i32_91] : memref<16x128xf32, #tpu.memory_space<vmem>> -> memref<1x128xf32, #tpu.memory_space<vmem>>
    %184 = tpu.memref_squeeze %183 : memref<1x128xf32, #tpu.memory_space<vmem>> -> memref<128xf32, #tpu.memory_space<vmem>>
    %185 = tpu.memref_slice %arg4[%c6_i32_89] : memref<16x!tpu.dma_semaphore, #tpu.memory_space<semaphore_mem>> -> memref<1x!tpu.dma_semaphore, #tpu.memory_space<semaphore_mem>>
    %186 = tpu.memref_squeeze %185 : memref<1x!tpu.dma_semaphore, #tpu.memory_space<semaphore_mem>> -> memref<!tpu.dma_semaphore, #tpu.memory_space<semaphore_mem>>
    tpu.wait_dma2 semaphore(%186 : memref<!tpu.dma_semaphore, #tpu.memory_space<semaphore_mem>>) src(%182 : memref<128xf32, #tpu.memory_space<any>>) dst(%184 : memref<128xf32, #tpu.memory_space<vmem>>)
    %c7_i32_92 = arith.constant 7 : i32
    %c7_i32_93 = arith.constant 7 : i32
    %c0_i32_94 = arith.constant 0 : i32
    %187 = tpu.memref_slice %arg2[%66, %c0_i32_94] : memref<128x128xf32, #tpu.memory_space<any>> -> memref<1x128xf32, #tpu.memory_space<any>>
    %188 = tpu.memref_squeeze %187 : memref<1x128xf32, #tpu.memory_space<any>> -> memref<128xf32, #tpu.memory_space<any>>
    %c0_i32_95 = arith.constant 0 : i32
    %189 = tpu.memref_slice %arg3[%c7_i32_92, %c0_i32_95] : memref<16x128xf32, #tpu.memory_space<vmem>> -> memref<1x128xf32, #tpu.memory_space<vmem>>
    %190 = tpu.memref_squeeze %189 : memref<1x128xf32, #tpu.memory_space<vmem>> -> memref<128xf32, #tpu.memory_space<vmem>>
    %191 = tpu.memref_slice %arg4[%c7_i32_93] : memref<16x!tpu.dma_semaphore, #tpu.memory_space<semaphore_mem>> -> memref<1x!tpu.dma_semaphore, #tpu.memory_space<semaphore_mem>>
    %192 = tpu.memref_squeeze %191 : memref<1x!tpu.dma_semaphore, #tpu.memory_space<semaphore_mem>> -> memref<!tpu.dma_semaphore, #tpu.memory_space<semaphore_mem>>
    tpu.wait_dma2 semaphore(%192 : memref<!tpu.dma_semaphore, #tpu.memory_space<semaphore_mem>>) src(%188 : memref<128xf32, #tpu.memory_space<any>>) dst(%190 : memref<128xf32, #tpu.memory_space<vmem>>)
    %c8_i32_96 = arith.constant 8 : i32
    %c8_i32_97 = arith.constant 8 : i32
    %c0_i32_98 = arith.constant 0 : i32
    %193 = tpu.memref_slice %arg2[%75, %c0_i32_98] : memref<128x128xf32, #tpu.memory_space<any>> -> memref<1x128xf32, #tpu.memory_space<any>>
    %194 = tpu.memref_squeeze %193 : memref<1x128xf32, #tpu.memory_space<any>> -> memref<128xf32, #tpu.memory_space<any>>
    %c0_i32_99 = arith.constant 0 : i32
    %195 = tpu.memref_slice %arg3[%c8_i32_96, %c0_i32_99] : memref<16x128xf32, #tpu.memory_space<vmem>> -> memref<1x128xf32, #tpu.memory_space<vmem>>
    %196 = tpu.memref_squeeze %195 : memref<1x128xf32, #tpu.memory_space<vmem>> -> memref<128xf32, #tpu.memory_space<vmem>>
    %197 = tpu.memref_slice %arg4[%c8_i32_97] : memref<16x!tpu.dma_semaphore, #tpu.memory_space<semaphore_mem>> -> memref<1x!tpu.dma_semaphore, #tpu.memory_space<semaphore_mem>>
    %198 = tpu.memref_squeeze %197 : memref<1x!tpu.dma_semaphore, #tpu.memory_space<semaphore_mem>> -> memref<!tpu.dma_semaphore, #tpu.memory_space<semaphore_mem>>
    tpu.wait_dma2 semaphore(%198 : memref<!tpu.dma_semaphore, #tpu.memory_space<semaphore_mem>>) src(%194 : memref<128xf32, #tpu.memory_space<any>>) dst(%196 : memref<128xf32, #tpu.memory_space<vmem>>)
    %c9_i32_100 = arith.constant 9 : i32
    %c9_i32_101 = arith.constant 9 : i32
    %c0_i32_102 = arith.constant 0 : i32
    %199 = tpu.memref_slice %arg2[%84, %c0_i32_102] : memref<128x128xf32, #tpu.memory_space<any>> -> memref<1x128xf32, #tpu.memory_space<any>>
    %200 = tpu.memref_squeeze %199 : memref<1x128xf32, #tpu.memory_space<any>> -> memref<128xf32, #tpu.memory_space<any>>
    %c0_i32_103 = arith.constant 0 : i32
    %201 = tpu.memref_slice %arg3[%c9_i32_100, %c0_i32_103] : memref<16x128xf32, #tpu.memory_space<vmem>> -> memref<1x128xf32, #tpu.memory_space<vmem>>
    %202 = tpu.memref_squeeze %201 : memref<1x128xf32, #tpu.memory_space<vmem>> -> memref<128xf32, #tpu.memory_space<vmem>>
    %203 = tpu.memref_slice %arg4[%c9_i32_101] : memref<16x!tpu.dma_semaphore, #tpu.memory_space<semaphore_mem>> -> memref<1x!tpu.dma_semaphore, #tpu.memory_space<semaphore_mem>>
    %204 = tpu.memref_squeeze %203 : memref<1x!tpu.dma_semaphore, #tpu.memory_space<semaphore_mem>> -> memref<!tpu.dma_semaphore, #tpu.memory_space<semaphore_mem>>
    tpu.wait_dma2 semaphore(%204 : memref<!tpu.dma_semaphore, #tpu.memory_space<semaphore_mem>>) src(%200 : memref<128xf32, #tpu.memory_space<any>>) dst(%202 : memref<128xf32, #tpu.memory_space<vmem>>)
    %c10_i32_104 = arith.constant 10 : i32
    %c10_i32_105 = arith.constant 10 : i32
    %c0_i32_106 = arith.constant 0 : i32
    %205 = tpu.memref_slice %arg2[%93, %c0_i32_106] : memref<128x128xf32, #tpu.memory_space<any>> -> memref<1x128xf32, #tpu.memory_space<any>>
    %206 = tpu.memref_squeeze %205 : memref<1x128xf32, #tpu.memory_space<any>> -> memref<128xf32, #tpu.memory_space<any>>
    %c0_i32_107 = arith.constant 0 : i32
    %207 = tpu.memref_slice %arg3[%c10_i32_104, %c0_i32_107] : memref<16x128xf32, #tpu.memory_space<vmem>> -> memref<1x128xf32, #tpu.memory_space<vmem>>
    %208 = tpu.memref_squeeze %207 : memref<1x128xf32, #tpu.memory_space<vmem>> -> memref<128xf32, #tpu.memory_space<vmem>>
    %209 = tpu.memref_slice %arg4[%c10_i32_105] : memref<16x!tpu.dma_semaphore, #tpu.memory_space<semaphore_mem>> -> memref<1x!tpu.dma_semaphore, #tpu.memory_space<semaphore_mem>>
    %210 = tpu.memref_squeeze %209 : memref<1x!tpu.dma_semaphore, #tpu.memory_space<semaphore_mem>> -> memref<!tpu.dma_semaphore, #tpu.memory_space<semaphore_mem>>
    tpu.wait_dma2 semaphore(%210 : memref<!tpu.dma_semaphore, #tpu.memory_space<semaphore_mem>>) src(%206 : memref<128xf32, #tpu.memory_space<any>>) dst(%208 : memref<128xf32, #tpu.memory_space<vmem>>)
    %c11_i32_108 = arith.constant 11 : i32
    %c11_i32_109 = arith.constant 11 : i32
    %c0_i32_110 = arith.constant 0 : i32
    %211 = tpu.memref_slice %arg2[%102, %c0_i32_110] : memref<128x128xf32, #tpu.memory_space<any>> -> memref<1x128xf32, #tpu.memory_space<any>>
    %212 = tpu.memref_squeeze %211 : memref<1x128xf32, #tpu.memory_space<any>> -> memref<128xf32, #tpu.memory_space<any>>
    %c0_i32_111 = arith.constant 0 : i32
    %213 = tpu.memref_slice %arg3[%c11_i32_108, %c0_i32_111] : memref<16x128xf32, #tpu.memory_space<vmem>> -> memref<1x128xf32, #tpu.memory_space<vmem>>
    %214 = tpu.memref_squeeze %213 : memref<1x128xf32, #tpu.memory_space<vmem>> -> memref<128xf32, #tpu.memory_space<vmem>>
    %215 = tpu.memref_slice %arg4[%c11_i32_109] : memref<16x!tpu.dma_semaphore, #tpu.memory_space<semaphore_mem>> -> memref<1x!tpu.dma_semaphore, #tpu.memory_space<semaphore_mem>>
    %216 = tpu.memref_squeeze %215 : memref<1x!tpu.dma_semaphore, #tpu.memory_space<semaphore_mem>> -> memref<!tpu.dma_semaphore, #tpu.memory_space<semaphore_mem>>
    tpu.wait_dma2 semaphore(%216 : memref<!tpu.dma_semaphore, #tpu.memory_space<semaphore_mem>>) src(%212 : memref<128xf32, #tpu.memory_space<any>>) dst(%214 : memref<128xf32, #tpu.memory_space<vmem>>)
    %c12_i32_112 = arith.constant 12 : i32
    %c12_i32_113 = arith.constant 12 : i32
    %c0_i32_114 = arith.constant 0 : i32
    %217 = tpu.memref_slice %arg2[%111, %c0_i32_114] : memref<128x128xf32, #tpu.memory_space<any>> -> memref<1x128xf32, #tpu.memory_space<any>>
    %218 = tpu.memref_squeeze %217 : memref<1x128xf32, #tpu.memory_space<any>> -> memref<128xf32, #tpu.memory_space<any>>
    %c0_i32_115 = arith.constant 0 : i32
    %219 = tpu.memref_slice %arg3[%c12_i32_112, %c0_i32_115] : memref<16x128xf32, #tpu.memory_space<vmem>> -> memref<1x128xf32, #tpu.memory_space<vmem>>
    %220 = tpu.memref_squeeze %219 : memref<1x128xf32, #tpu.memory_space<vmem>> -> memref<128xf32, #tpu.memory_space<vmem>>
    %221 = tpu.memref_slice %arg4[%c12_i32_113] : memref<16x!tpu.dma_semaphore, #tpu.memory_space<semaphore_mem>> -> memref<1x!tpu.dma_semaphore, #tpu.memory_space<semaphore_mem>>
    %222 = tpu.memref_squeeze %221 : memref<1x!tpu.dma_semaphore, #tpu.memory_space<semaphore_mem>> -> memref<!tpu.dma_semaphore, #tpu.memory_space<semaphore_mem>>
    tpu.wait_dma2 semaphore(%222 : memref<!tpu.dma_semaphore, #tpu.memory_space<semaphore_mem>>) src(%218 : memref<128xf32, #tpu.memory_space<any>>) dst(%220 : memref<128xf32, #tpu.memory_space<vmem>>)
    %c13_i32_116 = arith.constant 13 : i32
    %c13_i32_117 = arith.constant 13 : i32
    %c0_i32_118 = arith.constant 0 : i32
    %223 = tpu.memref_slice %arg2[%120, %c0_i32_118] : memref<128x128xf32, #tpu.memory_space<any>> -> memref<1x128xf32, #tpu.memory_space<any>>
    %224 = tpu.memref_squeeze %223 : memref<1x128xf32, #tpu.memory_space<any>> -> memref<128xf32, #tpu.memory_space<any>>
    %c0_i32_119 = arith.constant 0 : i32
    %225 = tpu.memref_slice %arg3[%c13_i32_116, %c0_i32_119] : memref<16x128xf32, #tpu.memory_space<vmem>> -> memref<1x128xf32, #tpu.memory_space<vmem>>
    %226 = tpu.memref_squeeze %225 : memref<1x128xf32, #tpu.memory_space<vmem>> -> memref<128xf32, #tpu.memory_space<vmem>>
    %227 = tpu.memref_slice %arg4[%c13_i32_117] : memref<16x!tpu.dma_semaphore, #tpu.memory_space<semaphore_mem>> -> memref<1x!tpu.dma_semaphore, #tpu.memory_space<semaphore_mem>>
    %228 = tpu.memref_squeeze %227 : memref<1x!tpu.dma_semaphore, #tpu.memory_space<semaphore_mem>> -> memref<!tpu.dma_semaphore, #tpu.memory_space<semaphore_mem>>
    tpu.wait_dma2 semaphore(%228 : memref<!tpu.dma_semaphore, #tpu.memory_space<semaphore_mem>>) src(%224 : memref<128xf32, #tpu.memory_space<any>>) dst(%226 : memref<128xf32, #tpu.memory_space<vmem>>)
    %c14_i32_120 = arith.constant 14 : i32
    %c14_i32_121 = arith.constant 14 : i32
    %c0_i32_122 = arith.constant 0 : i32
    %229 = tpu.memref_slice %arg2[%129, %c0_i32_122] : memref<128x128xf32, #tpu.memory_space<any>> -> memref<1x128xf32, #tpu.memory_space<any>>
    %230 = tpu.memref_squeeze %229 : memref<1x128xf32, #tpu.memory_space<any>> -> memref<128xf32, #tpu.memory_space<any>>
    %c0_i32_123 = arith.constant 0 : i32
    %231 = tpu.memref_slice %arg3[%c14_i32_120, %c0_i32_123] : memref<16x128xf32, #tpu.memory_space<vmem>> -> memref<1x128xf32, #tpu.memory_space<vmem>>
    %232 = tpu.memref_squeeze %231 : memref<1x128xf32, #tpu.memory_space<vmem>> -> memref<128xf32, #tpu.memory_space<vmem>>
    %233 = tpu.memref_slice %arg4[%c14_i32_121] : memref<16x!tpu.dma_semaphore, #tpu.memory_space<semaphore_mem>> -> memref<1x!tpu.dma_semaphore, #tpu.memory_space<semaphore_mem>>
    %234 = tpu.memref_squeeze %233 : memref<1x!tpu.dma_semaphore, #tpu.memory_space<semaphore_mem>> -> memref<!tpu.dma_semaphore, #tpu.memory_space<semaphore_mem>>
    tpu.wait_dma2 semaphore(%234 : memref<!tpu.dma_semaphore, #tpu.memory_space<semaphore_mem>>) src(%230 : memref<128xf32, #tpu.memory_space<any>>) dst(%232 : memref<128xf32, #tpu.memory_space<vmem>>)
    %c15_i32_124 = arith.constant 15 : i32
    %c15_i32_125 = arith.constant 15 : i32
    %c0_i32_126 = arith.constant 0 : i32
    %235 = tpu.memref_slice %arg2[%138, %c0_i32_126] : memref<128x128xf32, #tpu.memory_space<any>> -> memref<1x128xf32, #tpu.memory_space<any>>
    %236 = tpu.memref_squeeze %235 : memref<1x128xf32, #tpu.memory_space<any>> -> memref<128xf32, #tpu.memory_space<any>>
    %c0_i32_127 = arith.constant 0 : i32
    %237 = tpu.memref_slice %arg3[%c15_i32_124, %c0_i32_127] : memref<16x128xf32, #tpu.memory_space<vmem>> -> memref<1x128xf32, #tpu.memory_space<vmem>>
    %238 = tpu.memref_squeeze %237 : memref<1x128xf32, #tpu.memory_space<vmem>> -> memref<128xf32, #tpu.memory_space<vmem>>
    %239 = tpu.memref_slice %arg4[%c15_i32_125] : memref<16x!tpu.dma_semaphore, #tpu.memory_space<semaphore_mem>> -> memref<1x!tpu.dma_semaphore, #tpu.memory_space<semaphore_mem>>
    %240 = tpu.memref_squeeze %239 : memref<1x!tpu.dma_semaphore, #tpu.memory_space<semaphore_mem>> -> memref<!tpu.dma_semaphore, #tpu.memory_space<semaphore_mem>>
    tpu.wait_dma2 semaphore(%240 : memref<!tpu.dma_semaphore, #tpu.memory_space<semaphore_mem>>) src(%236 : memref<128xf32, #tpu.memory_space<any>>) dst(%238 : memref<128xf32, #tpu.memory_space<vmem>>)
    return
  }
  func.func @transform_1(%arg0: i32, %arg1: memref<16xi32, #tpu.memory_space<smem>>) -> (i32, i32) {
    %c0_i32 = arith.constant 0 : i32
    %c0_i32_0 = arith.constant 0 : i32
    return %arg0, %c0_i32 : i32, i32
  }
}

</mosaic_0001>

<bundles_post_ra>
// kernel: tpu_custom_call.1
= control target key start
LH: loop header
LB: loop body
LE: loop exit
PB: predicated region body
PF: predicated region fallthrough
CT: control target
= control target key end

     0   :  { %s955_s9 = smov [#allocation4]   ;;  %s1245_s0 = inlined_call_operand.hbm [shape: s32[16], index: 0, kind: input, shape index: {}]   ;;  %s1246_s1 = inlined_call_operand.hbm [shape: f32[128,128], index: 1, kind: input, shape index: {}]   ;;  %s1247_s2 = inlined_call_operand.hbm [shape: f32[16,128], index: 2, kind: output, shape index: {}]  }
   0x1   :  { %8 = dma.hbm_to_smem %s1245_s0, 16, %s955_s9, [#allocation3] }
   0x2   :  { %919 = dma.done.wait [#allocation3], 16 }
   0x3   :  { %920 = vsyncadd [#allocation3], 4294967280 }
   0x4   :  { %10 = sfence }
   0x5   :  { %11 = vsyncpa [#allocation6], 0  ;;  %s13_s12 = sld [smem:[#allocation4]]  ;;  %s956_s13 = smov [#allocation5]  }
   0x6   :  { %s23_s14 = sshll.u32 %s956_s13, 4  ;;  %s992_s15 = sld [smem:[#allocation4 + $0x1]]  ;;  %s994_s14 = int_to_ptr.vmem [resolvable:$true] %s23_s14 }
   0x7   :  { %s957_s16 = smov [#allocation5 + $0x1]   ;;  %s996_s18 = sld [smem:[#allocation4 + $0x2]] }
   0x8   :  { %s40_s17 = sshll.u32 %s957_s16, 4  ;;  %s958_s19 = smov [#allocation5 + $0x2]   ;;  %s998_s17 = int_to_ptr.vmem [resolvable:$true] %s40_s17 }
   0x9   :  { %s57_s0 = sshll.u32 %s958_s19, 4  ;;  %s1000_s20 = sld [smem:[#allocation4 + $0x3]]  ;;  %s1002_s0 = int_to_ptr.vmem [resolvable:$true] %s57_s0 }
   0xa   :  { %s1011_s29 = scalar_lea.hbm %s1246_s1, 2048 }
   0xb   :  { %s473_s21 = sshll.u32 %s13_s12, 4 }
   0xc   :  { %s15_s24 = scalar_lea.hbm %s1246_s1, %s473_s21  ;;  %s475_s25 = sshll.u32 %s992_s15, 4 }
   0xd   :  { %s547_s26 = scalar_lea.hbm %s15_s24, 16  ;;  %p550_p1 = scmp.lt.s32.totalorder %s15_s24, %s1246_s1 }
   0xe   :  { %p548_p0 = scmp.ne.s32.totalorder %s15_s24, %s547_s26  ;;  %p551_p2 = scmp.lt.s32.totalorder %s1011_s29, %s547_s26 }
  0x10   :  { %p552_p3 = por %p551_p2, %p550_p1 }
  0x12   :  { %p553_p4 = pnand %p552_p3, %p548_p0 }
  0x14   :  { %556 = shalt.err (!%p553_p4)  }
  0x15   :  { %s557_s4 = scalar_lea.vmem %s994_s14, 16  ;;  %s1020_s5 = scalar_lea.vmem %s994_s14, 256 }
  0x16   :  { %p558_p5 = scmp.ne.s32.totalorder %s994_s14, %s557_s4  ;;  %p562_p6 = scmp.lt.s32.totalorder %s994_s14, %s994_s14 }
  0x17   :  { %p563_p7 = scmp.lt.s32.totalorder %s1020_s5, %s557_s4 }
  0x19   :  { %p564_p8 = por %p563_p7, %p562_p6 }
  0x1b   :  { %p565_p9 = pnand %p564_p8, %p558_p5 }
  0x1d   :  { %568 = shalt.err (!%p565_p9)  }
  0x1e   :  { %26 = dma.hbm_to_vmem [thread:$0]  %s15_s24, 16, %s994_s14, [#allocation2] }
  0x1f   :  { %s30_s8 = scalar_lea.hbm %s1246_s1, %s475_s25  ;;  %s477_s9 = sshll.u32 %s996_s18, 4 }
  0x20   :  { %s569_s10 = scalar_lea.hbm %s30_s8, 16  ;;  %p572_p11 = scmp.lt.s32.totalorder %s30_s8, %s1246_s1 }
  0x21   :  { %p570_p10 = scmp.ne.s32.totalorder %s30_s8, %s569_s10  ;;  %p573_p12 = scmp.lt.s32.totalorder %s1011_s29, %s569_s10 }
  0x23   :  { %p574_p13 = por %p573_p12, %p572_p11 }
  0x25   :  { %p575_p0 = pnand %p574_p13, %p570_p10 }
  0x27   :  { %578 = shalt.err (!%p575_p0)  }
  0x28   :  { %s579_s13 = scalar_lea.vmem %s998_s17, 16  ;;  %p584_p2 = scmp.lt.s32.totalorder %s998_s17, %s994_s14 }
  0x29   :  { %p580_p1 = scmp.ne.s32.totalorder %s998_s17, %s579_s13  ;;  %p585_p3 = scmp.lt.s32.totalorder %s1020_s5, %s579_s13 }
  0x2b   :  { %p586_p4 = por %p585_p3, %p584_p2 }
  0x2d   :  { %p587_p5 = pnand %p586_p4, %p580_p1 }
  0x2f   :  { %590 = shalt.err (!%p587_p5)  }
  0x30   :  { %43 = dma.hbm_to_vmem [thread:$0]  %s30_s8, 16, %s998_s17, [#allocation2 + $0x1] }
  0x31   :  { %s47_s18 = scalar_lea.hbm %s1246_s1, %s477_s9  ;;  %s479_s19 = sshll.u32 %s1000_s20, 4 }
  0x32   :  { %s591_s21 = scalar_lea.hbm %s47_s18, 16  ;;  %p594_p8 = scmp.lt.s32.totalorder %s47_s18, %s1246_s1 }
  0x33   :  { %p592_p7 = scmp.ne.s32.totalorder %s47_s18, %s591_s21  ;;  %p595_p9 = scmp.lt.s32.totalorder %s1011_s29, %s591_s21 }
  0x35   :  { %p596_p10 = por %p595_p9, %p594_p8 }
  0x37   :  { %p597_p11 = pnand %p596_p10, %p592_p7 }
  0x39   :  { %600 = shalt.err (!%p597_p11)  }
  0x3a   :  { %s601_s17 = scalar_lea.vmem %s1002_s0, 16  ;;  %p606_p13 = scmp.lt.s32.totalorder %s1002_s0, %s994_s14 }
  0x3b   :  { %p602_p12 = scmp.ne.s32.totalorder %s1002_s0, %s601_s17  ;;  %p607_p0 = scmp.lt.s32.totalorder %s1020_s5, %s601_s17 }
  0x3d   :  { %p608_p1 = por %p607_p0, %p606_p13 }
  0x3f   :  { %p609_p2 = pnand %p608_p1, %p602_p12 }
  0x41   :  { %612 = shalt.err (!%p609_p2)  }
  0x42   :  { %60 = dma.hbm_to_vmem [thread:$0]  %s47_s18, 16, %s1002_s0, [#allocation2 + $0x2] }
  0x43   :  { %s64_s25 = scalar_lea.hbm %s1246_s1, %s479_s19  ;;  %s959_s26 = smov [#allocation5 + $0x3]  }
  0x44   :  { %s74_s27 = sshll.u32 %s959_s26, 4  ;;  %s480_s28 = sld [smem:[#allocation4 + $0x4]]  ;;  %s75_s27 = int_to_ptr.vmem [resolvable:$true] %s74_s27 }
  0x45   :  { %s613_s30 = scalar_lea.hbm %s64_s25, 16  ;;  %p616_p4 = scmp.lt.s32.totalorder %s64_s25, %s1246_s1 }
  0x46   :  { %p614_p3 = scmp.ne.s32.totalorder %s64_s25, %s613_s30  ;;  %p617_p5 = scmp.lt.s32.totalorder %s1011_s29, %s613_s30 }
  0x48   :  { %p618_p7 = por %p617_p5, %p616_p4 }
  0x4a   :  { %p619_p8 = pnand %p618_p7, %p614_p3 }
  0x4c   :  { %622 = shalt.err (!%p619_p8)  }
  0x4d   :  { %s623_s6 = scalar_lea.vmem %s75_s27, 16  ;;  %p628_p10 = scmp.lt.s32.totalorder %s75_s27, %s994_s14 }
  0x4e   :  { %p624_p9 = scmp.ne.s32.totalorder %s75_s27, %s623_s6  ;;  %p629_p11 = scmp.lt.s32.totalorder %s1020_s5, %s623_s6 }
  0x50   :  { %p630_p12 = por %p629_p11, %p628_p10 }
  0x52   :  { %p631_p13 = pnand %p630_p12, %p624_p9 }
  0x54   :  { %634 = shalt.err (!%p631_p13)  }
  0x55   :  { %77 = dma.hbm_to_vmem [thread:$0]  %s64_s25, 16, %s75_s27, [#allocation2 + $0x3] }
  0x56   :  { %s960_s0 = smov [#allocation5 + $0x4]   ;;  %s482_s8 = sld [smem:[#allocation4 + $0x5]] }
  0x57   :  { %s91_s7 = sshll.u32 %s960_s0, 4  ;;  %s961_s9 = smov [#allocation5 + $0x5]   ;;  %s92_s7 = int_to_ptr.vmem [resolvable:$true] %s91_s7 }
  0x58   :  { %s108_s10 = sshll.u32 %s961_s9, 4  ;;  %s1066_s11 = sld [smem:[#allocation4 + $0x6]]  ;;  %s1068_s10 = int_to_ptr.vmem [resolvable:$true] %s108_s10 }
  0x59   :  { %s481_s12 = sshll.u32 %s480_s28, 4 }
  0x5a   :  { %s81_s16 = scalar_lea.hbm %s1246_s1, %s481_s12 }
  0x5b   :  { %s635_s18 = scalar_lea.hbm %s81_s16, 16  ;;  %p638_p1 = scmp.lt.s32.totalorder %s81_s16, %s1246_s1 }
  0x5c   :  { %p636_p0 = scmp.ne.s32.totalorder %s81_s16, %s635_s18  ;;  %p639_p2 = scmp.lt.s32.totalorder %s1011_s29, %s635_s18 }
  0x5e   :  { %p640_p3 = por %p639_p2, %p638_p1 }
  0x60   :  { %p641_p4 = pnand %p640_p3, %p636_p0 }
  0x62   :  { %644 = shalt.err (!%p641_p4)  }
  0x63   :  { %s645_s22 = scalar_lea.vmem %s92_s7, 16  ;;  %p650_p7 = scmp.lt.s32.totalorder %s92_s7, %s994_s14 }
  0x64   :  { %p646_p5 = scmp.ne.s32.totalorder %s92_s7, %s645_s22  ;;  %p651_p8 = scmp.lt.s32.totalorder %s1020_s5, %s645_s22 }
  0x66   :  { %p652_p9 = por %p651_p8, %p650_p7 }
  0x68   :  { %p653_p10 = pnand %p652_p9, %p646_p5 }
  0x6a   :  { %656 = shalt.err (!%p653_p10)  }
  0x6b   :  { %94 = dma.hbm_to_vmem [thread:$0]  %s81_s16, 16, %s92_s7, [#allocation2 + $0x4] }
  0x6c   :  { %s483_s23 = sshll.u32 %s482_s8, 4  ;;  %s962_s17 = smov [#allocation5 + $0x6]  }
  0x6d   :  { %s125_s20 = sshll.u32 %s962_s17, 4  ;;  %s98_s26 = scalar_lea.hbm %s1246_s1, %s483_s23  ;;  %s1082_s20 = int_to_ptr.vmem [resolvable:$true] %s125_s20 }
  0x6e   :  { %s657_s27 = scalar_lea.hbm %s98_s26, 16  ;;  %p660_p12 = scmp.lt.s32.totalorder %s98_s26, %s1246_s1 }
  0x6f   :  { %p658_p11 = scmp.ne.s32.totalorder %s98_s26, %s657_s27  ;;  %p661_p13 = scmp.lt.s32.totalorder %s1011_s29, %s657_s27 }
  0x71   :  { %p662_p0 = por %p661_p13, %p660_p12 }
  0x73   :  { %p663_p1 = pnand %p662_p0, %p658_p11 }
  0x75   :  { %666 = shalt.err (!%p663_p1)  }
  0x76   :  { %s667_s3 = scalar_lea.vmem %s1068_s10, 16  ;;  %p672_p3 = scmp.lt.s32.totalorder %s1068_s10, %s994_s14 }
  0x77   :  { %p668_p2 = scmp.ne.s32.totalorder %s1068_s10, %s667_s3  ;;  %p673_p4 = scmp.lt.s32.totalorder %s1020_s5, %s667_s3 }
  0x79   :  { %p674_p5 = por %p673_p4, %p672_p3 }
  0x7b   :  { %p675_p7 = pnand %p674_p5, %p668_p2 }
  0x7d   :  { %678 = shalt.err (!%p675_p7)  }
  0x7e   :  { %111 = dma.hbm_to_vmem [thread:$0]  %s98_s26, 16, %s1068_s10, [#allocation2 + $0x5] }
  0x7f   :  { %s485_s4 = sshll.u32 %s1066_s11, 4  ;;  %s486_s6 = sld [smem:[#allocation4 + $0x7]] }
  0x80   :  { %s115_s8 = scalar_lea.hbm %s1246_s1, %s485_s4 }
  0x81   :  { %s679_s9 = scalar_lea.hbm %s115_s8, 16  ;;  %p682_p9 = scmp.lt.s32.totalorder %s115_s8, %s1246_s1 }
  0x82   :  { %p680_p8 = scmp.ne.s32.totalorder %s115_s8, %s679_s9  ;;  %p683_p10 = scmp.lt.s32.totalorder %s1011_s29, %s679_s9 }
  0x84   :  { %p684_p11 = por %p683_p10, %p682_p9 }
  0x86   :  { %p685_p12 = pnand %p684_p11, %p680_p8 }
  0x88   :  { %688 = shalt.err (!%p685_p12)  }
  0x89   :  { %s689_s10 = scalar_lea.vmem %s1082_s20, 16  ;;  %p694_p0 = scmp.lt.s32.totalorder %s1082_s20, %s994_s14 }
  0x8a   :  { %p690_p13 = scmp.ne.s32.totalorder %s1082_s20, %s689_s10  ;;  %p695_p1 = scmp.lt.s32.totalorder %s1020_s5, %s689_s10 }
  0x8c   :  { %p696_p2 = por %p695_p1, %p694_p0 }
  0x8e   :  { %p697_p3 = pnand %p696_p2, %p690_p13 }
  0x90   :  { %700 = shalt.err (!%p697_p3)  }
  0x91   :  { %128 = dma.hbm_to_vmem [thread:$0]  %s115_s8, 16, %s1082_s20, [#allocation2 + $0x6] }
  0x92   :  { %s963_s11 = smov [#allocation5 + $0x7]   ;;  %s488_s16 = sld [smem:[#allocation4 + $0x8]] }
  0x93   :  { %s142_s15 = sshll.u32 %s963_s11, 4  ;;  %s964_s18 = smov [#allocation5 + $0x8]   ;;  %s143_s15 = int_to_ptr.vmem [resolvable:$true] %s142_s15 }
  0x94   :  { %s159_s19 = sshll.u32 %s964_s18, 4  ;;  %s1108_s21 = sld [smem:[#allocation4 + $0x9]]  ;;  %s1110_s19 = int_to_ptr.vmem [resolvable:$true] %s159_s19 }
  0x95   :  { %s487_s22 = sshll.u32 %s486_s6, 4 }
  0x96   :  { %s132_s24 = scalar_lea.hbm %s1246_s1, %s487_s22 }
  0x97   :  { %s701_s25 = scalar_lea.hbm %s132_s24, 16  ;;  %p704_p5 = scmp.lt.s32.totalorder %s132_s24, %s1246_s1 }
  0x98   :  { %p702_p4 = scmp.ne.s32.totalorder %s132_s24, %s701_s25  ;;  %p705_p7 = scmp.lt.s32.totalorder %s1011_s29, %s701_s25 }
  0x9a   :  { %p706_p8 = por %p705_p7, %p704_p5 }
  0x9c   :  { %p707_p9 = pnand %p706_p8, %p702_p4 }
  0x9e   :  { %710 = shalt.err (!%p707_p9)  }
  0x9f   :  { %s711_s20 = scalar_lea.vmem %s143_s15, 16  ;;  %p716_p11 = scmp.lt.s32.totalorder %s143_s15, %s994_s14 }
  0xa0   :  { %p712_p10 = scmp.ne.s32.totalorder %s143_s15, %s711_s20  ;;  %p717_p12 = scmp.lt.s32.totalorder %s1020_s5, %s711_s20 }
  0xa2   :  { %p718_p13 = por %p717_p12, %p716_p11 }
  0xa4   :  { %p719_p0 = pnand %p718_p13, %p712_p10 }
  0xa6   :  { %722 = shalt.err (!%p719_p0)  }
  0xa7   :  { %145 = dma.hbm_to_vmem [thread:$0]  %s132_s24, 16, %s143_s15, [#allocation2 + $0x7] }
  0xa8   :  { %s489_s28 = sshll.u32 %s488_s16, 4  ;;  %s965_s30 = smov [#allocation5 + $0x9]  }
  0xa9   :  { %s176_s3 = sshll.u32 %s965_s30, 4  ;;  %s149_s0 = scalar_lea.hbm %s1246_s1, %s489_s28  ;;  %s1124_s3 = int_to_ptr.vmem [resolvable:$true] %s176_s3 }
  0xaa   :  { %s723_s7 = scalar_lea.hbm %s149_s0, 16  ;;  %p726_p2 = scmp.lt.s32.totalorder %s149_s0, %s1246_s1 }
  0xab   :  { %p724_p1 = scmp.ne.s32.totalorder %s149_s0, %s723_s7  ;;  %p727_p3 = scmp.lt.s32.totalorder %s1011_s29, %s723_s7 }
  0xad   :  { %p728_p4 = por %p727_p3, %p726_p2 }
  0xaf   :  { %p729_p5 = pnand %p728_p4, %p724_p1 }
  0xb1   :  { %732 = shalt.err (!%p729_p5)  }
  0xb2   :  { %s733_s12 = scalar_lea.vmem %s1110_s19, 16  ;;  %p738_p8 = scmp.lt.s32.totalorder %s1110_s19, %s994_s14 }
  0xb3   :  { %p734_p7 = scmp.ne.s32.totalorder %s1110_s19, %s733_s12  ;;  %p739_p9 = scmp.lt.s32.totalorder %s1020_s5, %s733_s12 }
  0xb5   :  { %p740_p10 = por %p739_p9, %p738_p8 }
  0xb7   :  { %p741_p11 = pnand %p740_p10, %p734_p7 }
  0xb9   :  { %744 = shalt.err (!%p741_p11)  }
  0xba   :  { %162 = dma.hbm_to_vmem [thread:$0]  %s149_s0, 16, %s1110_s19, [#allocation2 + $0x8] }
  0xbb   :  { %s491_s13 = sshll.u32 %s1108_s21, 4  ;;  %s492_s10 = sld [smem:[#allocation4 + $0xa]] }
  0xbc   :  { %s166_s16 = scalar_lea.hbm %s1246_s1, %s491_s13 }
  0xbd   :  { %s745_s18 = scalar_lea.hbm %s166_s16, 16  ;;  %p748_p13 = scmp.lt.s32.totalorder %s166_s16, %s1246_s1 }
  0xbe   :  { %p746_p12 = scmp.ne.s32.totalorder %s166_s16, %s745_s18  ;;  %p749_p0 = scmp.lt.s32.totalorder %s1011_s29, %s745_s18 }
  0xc0   :  { %p750_p1 = por %p749_p0, %p748_p13 }
  0xc2   :  { %p751_p2 = pnand %p750_p1, %p746_p12 }
  0xc4   :  { %754 = shalt.err (!%p751_p2)  }
  0xc5   :  { %s755_s19 = scalar_lea.vmem %s1124_s3, 16  ;;  %p760_p4 = scmp.lt.s32.totalorder %s1124_s3, %s994_s14 }
  0xc6   :  { %p756_p3 = scmp.ne.s32.totalorder %s1124_s3, %s755_s19  ;;  %p761_p5 = scmp.lt.s32.totalorder %s1020_s5, %s755_s19 }
  0xc8   :  { %p762_p7 = por %p761_p5, %p760_p4 }
  0xca   :  { %p763_p8 = pnand %p762_p7, %p756_p3 }
  0xcc   :  { %766 = shalt.err (!%p763_p8)  }
  0xcd   :  { %179 = dma.hbm_to_vmem [thread:$0]  %s166_s16, 16, %s1124_s3, [#allocation2 + $0x9] }
  0xce   :  { %s966_s21 = smov [#allocation5 + $0xa]   ;;  %s494_s24 = sld [smem:[#allocation4 + $0xb]] }
  0xcf   :  { %s193_s17 = sshll.u32 %s966_s21, 4  ;;  %s967_s25 = smov [#allocation5 + $0xb]   ;;  %s194_s17 = int_to_ptr.vmem [resolvable:$true] %s193_s17 }
  0xd0   :  { %s210_s26 = sshll.u32 %s967_s25, 4  ;;  %s1150_s27 = sld [smem:[#allocation4 + $0xc]]  ;;  %s1152_s26 = int_to_ptr.vmem [resolvable:$true] %s210_s26 }
  0xd1   :  { %s493_s20 = sshll.u32 %s492_s10, 4 }
  0xd2   :  { %s183_s4 = scalar_lea.hbm %s1246_s1, %s493_s20 }
  0xd3   :  { %s767_s6 = scalar_lea.hbm %s183_s4, 16  ;;  %p770_p10 = scmp.lt.s32.totalorder %s183_s4, %s1246_s1 }
  0xd4   :  { %p768_p9 = scmp.ne.s32.totalorder %s183_s4, %s767_s6  ;;  %p771_p11 = scmp.lt.s32.totalorder %s1011_s29, %s767_s6 }
  0xd6   :  { %p772_p12 = por %p771_p11, %p770_p10 }
  0xd8   :  { %p773_p13 = pnand %p772_p12, %p768_p9 }
  0xda   :  { %776 = shalt.err (!%p773_p13)  }
  0xdb   :  { %s777_s3 = scalar_lea.vmem %s194_s17, 16  ;;  %p782_p1 = scmp.lt.s32.totalorder %s194_s17, %s994_s14 }
  0xdc   :  { %p778_p0 = scmp.ne.s32.totalorder %s194_s17, %s777_s3  ;;  %p783_p2 = scmp.lt.s32.totalorder %s1020_s5, %s777_s3 }
  0xde   :  { %p784_p3 = por %p783_p2, %p782_p1 }
  0xe0   :  { %p785_p4 = pnand %p784_p3, %p778_p0 }
  0xe2   :  { %788 = shalt.err (!%p785_p4)  }
  0xe3   :  { %196 = dma.hbm_to_vmem [thread:$0]  %s183_s4, 16, %s194_s17, [#allocation2 + $0xa] }
  0xe4   :  { %s495_s8 = sshll.u32 %s494_s24, 4  ;;  %s968_s9 = smov [#allocation5 + $0xc]  }
  0xe5   :  { %s227_s12 = sshll.u32 %s968_s9, 4  ;;  %s200_s11 = scalar_lea.hbm %s1246_s1, %s495_s8  ;;  %s1166_s12 = int_to_ptr.vmem [resolvable:$true] %s227_s12 }
  0xe6   :  { %s789_s15 = scalar_lea.hbm %s200_s11, 16  ;;  %p792_p7 = scmp.lt.s32.totalorder %s200_s11, %s1246_s1 }
  0xe7   :  { %p790_p5 = scmp.ne.s32.totalorder %s200_s11, %s789_s15  ;;  %p793_p8 = scmp.lt.s32.totalorder %s1011_s29, %s789_s15 }
  0xe9   :  { %p794_p9 = por %p793_p8, %p792_p7 }
  0xeb   :  { %p795_p10 = pnand %p794_p9, %p790_p5 }
  0xed   :  { %798 = shalt.err (!%p795_p10)  }
  0xee   :  { %s799_s22 = scalar_lea.vmem %s1152_s26, 16  ;;  %p804_p12 = scmp.lt.s32.totalorder %s1152_s26, %s994_s14 }
  0xef   :  { %p800_p11 = scmp.ne.s32.totalorder %s1152_s26, %s799_s22  ;;  %p805_p13 = scmp.lt.s32.totalorder %s1020_s5, %s799_s22 }
  0xf1   :  { %p806_p0 = por %p805_p13, %p804_p12 }
  0xf3   :  { %p807_p1 = pnand %p806_p0, %p800_p11 }
  0xf5   :  { %810 = shalt.err (!%p807_p1)  }
  0xf6   :  { %213 = dma.hbm_to_vmem [thread:$0]  %s200_s11, 16, %s1152_s26, [#allocation2 + $0xb] }
  0xf7   :  { %s497_s23 = sshll.u32 %s1150_s27, 4  ;;  %s498_s19 = sld [smem:[#allocation4 + $0xd]] }
  0xf8   :  { %s217_s24 = scalar_lea.hbm %s1246_s1, %s497_s23 }
  0xf9   :  { %s811_s25 = scalar_lea.hbm %s217_s24, 16  ;;  %p814_p3 = scmp.lt.s32.totalorder %s217_s24, %s1246_s1 }
  0xfa   :  { %p812_p2 = scmp.ne.s32.totalorder %s217_s24, %s811_s25  ;;  %p815_p4 = scmp.lt.s32.totalorder %s1011_s29, %s811_s25 }
  0xfc   :  { %p816_p5 = por %p815_p4, %p814_p3 }
  0xfe   :  { %p817_p7 = pnand %p816_p5, %p812_p2 }
 0x100   :  { %820 = shalt.err (!%p817_p7)  }
 0x101   :  { %s821_s26 = scalar_lea.vmem %s1166_s12, 16  ;;  %p826_p9 = scmp.lt.s32.totalorder %s1166_s12, %s994_s14 }
 0x102   :  { %p822_p8 = scmp.ne.s32.totalorder %s1166_s12, %s821_s26  ;;  %p827_p10 = scmp.lt.s32.totalorder %s1020_s5, %s821_s26 }
 0x104   :  { %p828_p11 = por %p827_p10, %p826_p9 }
 0x106   :  { %p829_p12 = pnand %p828_p11, %p822_p8 }
 0x108   :  { %832 = shalt.err (!%p829_p12)  }
 0x109   :  { %230 = dma.hbm_to_vmem [thread:$0]  %s217_s24, 16, %s1166_s12, [#allocation2 + $0xc] }
 0x10a   :  { %s969_s27 = smov [#allocation5 + $0xd]   ;;  %s500_s4 = sld [smem:[#allocation4 + $0xe]] }
 0x10b   :  { %s244_s30 = sshll.u32 %s969_s27, 4  ;;  %s970_s6 = smov [#allocation5 + $0xe]   ;;  %s245_s30 = int_to_ptr.vmem [resolvable:$true] %s244_s30 }
 0x10c   :  { %s261_s0 = sshll.u32 %s970_s6, 4  ;;  %s1192_s7 = sld [smem:[#allocation4 + $0xf]]  ;;  %s1194_s0 = int_to_ptr.vmem [resolvable:$true] %s261_s0 }
 0x10d   :  { %s499_s3 = sshll.u32 %s498_s19, 4 }
 0x10e   :  { %s234_s13 = scalar_lea.hbm %s1246_s1, %s499_s3 }
 0x10f   :  { %s833_s10 = scalar_lea.hbm %s234_s13, 16  ;;  %p836_p0 = scmp.lt.s32.totalorder %s234_s13, %s1246_s1 }
 0x110   :  { %p834_p13 = scmp.ne.s32.totalorder %s234_s13, %s833_s10  ;;  %p837_p1 = scmp.lt.s32.totalorder %s1011_s29, %s833_s10 }
 0x112   :  { %p838_p2 = por %p837_p1, %p836_p0 }
 0x114   :  { %p839_p3 = pnand %p838_p2, %p834_p13 }
 0x116   :  { %842 = shalt.err (!%p839_p3)  }
 0x117   :  { %s843_s12 = scalar_lea.vmem %s245_s30, 16  ;;  %p848_p5 = scmp.lt.s32.totalorder %s245_s30, %s994_s14 }
 0x118   :  { %p844_p4 = scmp.ne.s32.totalorder %s245_s30, %s843_s12  ;;  %p849_p7 = scmp.lt.s32.totalorder %s1020_s5, %s843_s12 }
 0x11a   :  { %p850_p8 = por %p849_p7, %p848_p5 }
 0x11c   :  { %p851_p9 = pnand %p850_p8, %p844_p4 }
 0x11e   :  { %854 = shalt.err (!%p851_p9)  }
 0x11f   :  { %247 = dma.hbm_to_vmem [thread:$0]  %s234_s13, 16, %s245_s30, [#allocation2 + $0xd] }
 0x120   :  { %s501_s16 = sshll.u32 %s500_s4, 4  ;;  %s971_s18 = smov [#allocation5 + $0xf]  }
 0x121   :  { %s278_s22 = sshll.u32 %s971_s18, 4  ;;  %s251_s21 = scalar_lea.hbm %s1246_s1, %s501_s16  ;;  %s1208_s22 = int_to_ptr.vmem [resolvable:$true] %s278_s22 }
 0x122   :  { %s855_s17 = scalar_lea.hbm %s251_s21, 16  ;;  %p858_p11 = scmp.lt.s32.totalorder %s251_s21, %s1246_s1 }
 0x123   :  { %p856_p10 = scmp.ne.s32.totalorder %s251_s21, %s855_s17  ;;  %p859_p12 = scmp.lt.s32.totalorder %s1011_s29, %s855_s17 }
 0x125   :  { %p860_p13 = por %p859_p12, %p858_p11 }
 0x127   :  { %p861_p0 = pnand %p860_p13, %p856_p10 }
 0x129   :  { %864 = shalt.err (!%p861_p0)  }
 0x12a   :  { %s865_s20 = scalar_lea.vmem %s1194_s0, 16  ;;  %p870_p2 = scmp.lt.s32.totalorder %s1194_s0, %s994_s14 }
 0x12b   :  { %p866_p1 = scmp.ne.s32.totalorder %s1194_s0, %s865_s20  ;;  %p871_p3 = scmp.lt.s32.totalorder %s1020_s5, %s865_s20 }
 0x12d   :  { %p872_p4 = por %p871_p3, %p870_p2 }
 0x12f   :  { %p873_p5 = pnand %p872_p4, %p866_p1 }
 0x131   :  { %876 = shalt.err (!%p873_p5)  }
 0x132   :  { %264 = dma.hbm_to_vmem [thread:$0]  %s251_s21, 16, %s1194_s0, [#allocation2 + $0xe] }
 0x133   :  { %s503_s28 = sshll.u32 %s1192_s7, 4 }
 0x134   :  { %s268_s30 = scalar_lea.hbm %s1246_s1, %s503_s28 }
 0x135   :  { %s877_s4 = scalar_lea.hbm %s268_s30, 16  ;;  %p880_p8 = scmp.lt.s32.totalorder %s268_s30, %s1246_s1 }
 0x136   :  { %p878_p7 = scmp.ne.s32.totalorder %s268_s30, %s877_s4  ;;  %p881_p9 = scmp.lt.s32.totalorder %s1011_s29, %s877_s4 }
 0x138   :  { %p882_p10 = por %p881_p9, %p880_p8 }
 0x13a   :  { %p883_p11 = pnand %p882_p10, %p878_p7 }
 0x13c   :  { %886 = shalt.err (!%p883_p11)  }
 0x13d   :  { %s887_s0 = scalar_lea.vmem %s1208_s22, 16  ;;  %p892_p13 = scmp.lt.s32.totalorder %s1208_s22, %s994_s14 }
 0x13e   :  { %p888_p12 = scmp.ne.s32.totalorder %s1208_s22, %s887_s0  ;;  %p893_p0 = scmp.lt.s32.totalorder %s1020_s5, %s887_s0 }
 0x140   :  { %p894_p1 = por %p893_p0, %p892_p13 }
 0x142   :  { %p895_p2 = pnand %p894_p1, %p888_p12 }
 0x144   :  { %898 = shalt.err (!%p895_p2)  }
 0x145   :  { %281 = dma.hbm_to_vmem [thread:$0]  %s268_s30, 16, %s1208_s22, [#allocation2 + $0xf] }
 0x146   :  { %921 = dma.done.wait [#allocation2], 16 }
 0x147   :  { %922 = vsyncadd [#allocation2], 4294967280 }
 0x148   :  { %923 = dma.done.wait [#allocation2 + $0x1], 16 }
 0x149   :  { %924 = vsyncadd [#allocation2 + $0x1], 4294967280 }
 0x14a   :  { %925 = dma.done.wait [#allocation2 + $0x2], 16 }
 0x14b   :  { %926 = vsyncadd [#allocation2 + $0x2], 4294967280 }
 0x14c   :  { %927 = dma.done.wait [#allocation2 + $0x3], 16 }
 0x14d   :  { %928 = vsyncadd [#allocation2 + $0x3], 4294967280 }
 0x14e   :  { %929 = dma.done.wait [#allocation2 + $0x4], 16 }
 0x14f   :  { %930 = vsyncadd [#allocation2 + $0x4], 4294967280 }
 0x150   :  { %931 = dma.done.wait [#allocation2 + $0x5], 16 }
 0x151   :  { %932 = vsyncadd [#allocation2 + $0x5], 4294967280 }
 0x152   :  { %933 = dma.done.wait [#allocation2 + $0x6], 16 }
 0x153   :  { %934 = vsyncadd [#allocation2 + $0x6], 4294967280 }
 0x154   :  { %935 = dma.done.wait [#allocation2 + $0x7], 16 }
 0x155   :  { %936 = vsyncadd [#allocation2 + $0x7], 4294967280 }
 0x156   :  { %937 = dma.done.wait [#allocation2 + $0x8], 16 }
 0x157   :  { %938 = vsyncadd [#allocation2 + $0x8], 4294967280 }
 0x158   :  { %939 = dma.done.wait [#allocation2 + $0x9], 16 }
 0x159   :  { %940 = vsyncadd [#allocation2 + $0x9], 4294967280 }
 0x15a   :  { %941 = dma.done.wait [#allocation2 + $0xa], 16 }
 0x15b   :  { %942 = vsyncadd [#allocation2 + $0xa], 4294967280 }
 0x15c   :  { %943 = dma.done.wait [#allocation2 + $0xb], 16 }
 0x15d   :  { %944 = vsyncadd [#allocation2 + $0xb], 4294967280 }
 0x15e   :  { %945 = dma.done.wait [#allocation2 + $0xc], 16 }
 0x15f   :  { %946 = vsyncadd [#allocation2 + $0xc], 4294967280 }
 0x160   :  { %947 = dma.done.wait [#allocation2 + $0xd], 16 }
 0x161   :  { %948 = vsyncadd [#allocation2 + $0xd], 4294967280 }
 0x162   :  { %949 = dma.done.wait [#allocation2 + $0xe], 16 }
 0x163   :  { %950 = vsyncadd [#allocation2 + $0xe], 4294967280 }
 0x164   :  { %951 = dma.done.wait [#allocation2 + $0xf], 16 }
 0x165   :  { %952 = vsyncadd [#allocation2 + $0xf], 4294967280  ;;  %p900_p3 = scmp.ne.s32.totalorder %s994_s14, %s1020_s5  ;;  %p905_p4 = scmp.lt.s32.totalorder %s1020_s5, %s1020_s5 }
 0x167   :  { %p906_p5 = por %p905_p4, %p562_p6 }
 0x169   :  { %p907_p7 = pnand %p906_p5, %p900_p3 }
 0x16b   :  { %910 = shalt.err (!%p907_p7)
}
 0x16c   :  { %s972_s1 = smov 128   ;;  %s973_s29 = smov 8  }
 0x16d   :  { %325 = dma.vmem_to_hbm [thread:$0]  %s994_s14, 256, %s1247_s2, [#allocation6], %s972_s1, %s972_s1, %s973_s29  }
 0x16e   :  { %953 = dma.done.wait [#allocation6], 256  }
 0x16f   :  { %954 = vsyncadd [#allocation6], 4294967040 }
 0x170   :  { %329 = vsyncpa [#allocation6], 1 }
 0x171   :  { %330 = vsyncmov [#allocation2] }
 0x174   :  { %s331_s9 = vpop.sfrf %330 }
 0x175   :  { %p504_p8 = scmp.ne.s32.totalorder %s331_s9, 0 }
 0x177   :  { %335 = shalt.err (%p504_p8)  }
 0x178   :  { %337 = vsyncmov [#allocation2 + $0x1] }
 0x17b   :  { %s338_s5 = vpop.sfrf %337 }
 0x17c   :  { %p505_p9 = scmp.ne.s32.totalorder %s338_s5, 0 }
 0x17e   :  { %342 = shalt.err (%p505_p9)  }
 0x17f   :  { %344 = vsyncmov [#allocation2 + $0x2] }
 0x182   :  { %s345_s13 = vpop.sfrf %344 }
 0x183   :  { %p506_p6 = scmp.ne.s32.totalorder %s345_s13, 0 }
 0x185   :  { %349 = shalt.err (%p506_p6)  }
 0x186   :  { %351 = vsyncmov [#allocation2 + $0x3] }
 0x189   :  { %s352_s10 = vpop.sfrf %351 }
 0x18a   :  { %p507_p10 = scmp.ne.s32.totalorder %s352_s10, 0 }
 0x18c   :  { %356 = shalt.err (%p507_p10)  }
 0x18d   :  { %358 = vsyncmov [#allocation2 + $0x4] }
 0x190   :  { %s359_s2 = vpop.sfrf %358 }
 0x191   :  { %p508_p11 = scmp.ne.s32.totalorder %s359_s2, 0 }
 0x193   :  { %363 = shalt.err (%p508_p11)  }
 0x194   :  { %365 = vsyncmov [#allocation2 + $0x5] }
 0x197   :  { %s366_s14 = vpop.sfrf %365 }
 0x198   :  { %p509_p12 = scmp.ne.s32.totalorder %s366_s14, 0 }
 0x19a   :  { %370 = shalt.err (%p509_p12)  }
 0x19b   :  { %372 = vsyncmov [#allocation2 + $0x6] }
 0x19e   :  { %s373_s11 = vpop.sfrf %372 }
 0x19f   :  { %p510_p13 = scmp.ne.s32.totalorder %s373_s11, 0 }
 0x1a1   :  { %377 = shalt.err (%p510_p13)  }
 0x1a2   :  { %379 = vsyncmov [#allocation2 + $0x7] }
 0x1a5   :  { %s380_s15 = vpop.sfrf %379 }
 0x1a6   :  { %p511_p0 = scmp.ne.s32.totalorder %s380_s15, 0 }
 0x1a8   :  { %384 = shalt.err (%p511_p0)  }
 0x1a9   :  { %386 = vsyncmov [#allocation2 + $0x8] }
 0x1ac   :  { %s387_s12 = vpop.sfrf %386 }
 0x1ad   :  { %p512_p1 = scmp.ne.s32.totalorder %s387_s12, 0 }
 0x1af   :  { %391 = shalt.err (%p512_p1)  }
 0x1b0   :  { %393 = vsyncmov [#allocation2 + $0x9] }
 0x1b3   :  { %s394_s16 = vpop.sfrf %393 }
 0x1b4   :  { %p513_p2 = scmp.ne.s32.totalorder %s394_s16, 0 }
 0x1b6   :  { %398 = shalt.err (%p513_p2)  }
 0x1b7   :  { %400 = vsyncmov [#allocation2 + $0xa] }
 0x1ba   :  { %s401_s18 = vpop.sfrf %400 }
 0x1bb   :  { %p514_p3 = scmp.ne.s32.totalorder %s401_s18, 0 }
 0x1bd   :  { %405 = shalt.err (%p514_p3)  }
 0x1be   :  { %407 = vsyncmov [#allocation2 + $0xb] }
 0x1c1   :  { %s408_s22 = vpop.sfrf %407 }
 0x1c2   :  { %p515_p4 = scmp.ne.s32.totalorder %s408_s22, 0 }
 0x1c4   :  { %412 = shalt.err (%p515_p4)  }
 0x1c5   :  { %414 = vsyncmov [#allocation2 + $0xc] }
 0x1c8   :  { %s415_s23 = vpop.sfrf %414 }
 0x1c9   :  { %p516_p5 = scmp.ne.s32.totalorder %s415_s23, 0 }
 0x1cb   :  { %419 = shalt.err (%p516_p5)  }
 0x1cc   :  { %421 = vsyncmov [#allocation2 + $0xd] }
 0x1cf   :  { %s422_s19 = vpop.sfrf %421 }
 0x1d0   :  { %p517_p7 = scmp.ne.s32.totalorder %s422_s19, 0 }
 0x1d2   :  { %426 = shalt.err (%p517_p7)  }
 0x1d3   :  { %428 = vsyncmov [#allocation2 + $0xe] }
 0x1d6   :  { %s429_s21 = vpop.sfrf %428 }
 0x1d7   :  { %p518_p8 = scmp.ne.s32.totalorder %s429_s21, 0 }
 0x1d9   :  { %433 = shalt.err (%p518_p8)  }
 0x1da   :  { %435 = vsyncmov [#allocation2 + $0xf] }
 0x1dd   :  { %s436_s17 = vpop.sfrf %435 }
 0x1de   :  { %p519_p9 = scmp.ne.s32.totalorder %s436_s17, 0 }
 0x1e0   :  { %440 = shalt.err (%p519_p9)  }

</bundles_post_ra>
